<compile_context>
chip_gen: v5e
topology: v5e:2x2
jax: 0.10.0
libtpu: 0.0.40
codegen_flags: <defaults>
</compile_context>

<pallas_src>
import numpy as np
import jax
import jax.numpy as jnp
from jax.experimental import pallas as pl
from jax.experimental.pallas import tpu as pltpu

HIDDEN = 32          # hidden_dim (divisible by num_heads=8)
BATCH = 2
TIME_STEPS = 1000
BETA_START, BETA_END = 1e-4, 2e-2

# ---- diffusion schedule: module-level constants -----------------------------
_BETA = np.linspace(BETA_START, BETA_END, TIME_STEPS, dtype=np.float32)
_ALPHA_BAR = np.cumprod((1.0 - _BETA).astype(np.float32)).astype(np.float32)
_SQRT_AB = np.sqrt(_ALPHA_BAR).astype(np.float32)
_SQRT_OMAB = np.sqrt(1.0 - _ALPHA_BAR).astype(np.float32)

# ---- raw ([in,out]-layout) H x H linear indices -----------------------------
R_TM0, R_TM1, R_CE0, R_CE1 = 0, 1, 2, 3          # time_mlp.{0,2}, cond_enc.{0,2}
R_D10, R_D12, R_D20, R_D22 = 4, 5, 6, 7          # down1.{0,2}, down2.{0,2}
R_VP, R_OP, R_M0, R_M2 = 8, 9, 10, 11            # attn.{v,out}_proj, mid.{0,2}
R_U12, R_U22, R_U32, R_FIN = 12, 13, 14, 15      # up{1,2,3}.2, final
N_RAW_HH = 16

# ---- packed weight-stack indices --------------------------------------------
WA_FRONT, WA_DM = 0, 1                                      # [2, H, 2H]
WB_FRONT2, WB_DM2, WB_U10, WB_U20, WB_U30 = 0, 1, 2, 3, 4   # [5, 2H, H]
WC_D20, WC_D22, WC_U12, WC_U22, WC_U3F = 0, 1, 2, 3, 4      # [5, H, H]

# ---- dense vector-pack row indices ([N_V, 2H]; H-wide rows use lanes [0:H]) --
V_BW_FRONT, V_BW_DM = 0, 1                       # pre-concatenated [1,2H] biases
V_B_TM1, V_B_CEF, V_B_D12, V_B_M2 = 2, 3, 4, 5
V_B_D20, V_B_D22 = 6, 7
V_LN1G, V_LN1B, V_LN2G, V_LN2B = 8, 9, 10, 11
V_B_U10, V_B_U12, V_B_U20, V_B_U22, V_B_U30, V_B_U3F = 12, 13, 14, 15, 16, 17
V_INVF = 18
N_V = 19

# ---- activation-pack planes; lanes of the per-row scalar plane --------------
A_X0, A_COND, A_EPS, A_SCAL = 0, 1, 2, 3
S_SAB, S_SOMAB, S_T = 0, 1, 2

LOSS_LANES = 128     # lane-dense per-block partial-loss output


def _erf(x):
    # Abramowitz–Stegun 7.1.26 rational approximation, |err| < 1.5e-7 (f32 only;
    # exact nn.GELU semantics without relying on an erf primitive lowering).
    p = 0.3275911
    a1, a2, a3, a4, a5 = (0.254829592, -0.284496736, 1.421413741,
                          -1.453152027, 1.061405429)
    sgn = jnp.where(x >= 0.0, 1.0, -1.0)
    ax = jnp.abs(x)
    t = 1.0 / (1.0 + p * ax)
    poly = ((((a5 * t + a4) * t + a3) * t + a2) * t + a1) * t
    return sgn * (1.0 - poly * jnp.exp(-ax * ax))


def _gelu_exact(x):
    # PyTorch nn.GELU() default: 0.5 * x * (1 + erf(x / sqrt(2)))
    return 0.5 * x * (1.0 + _erf(x * 0.7071067811865476))


def diffusion_kernel(act_ref, wa_ref, wb_ref, wc_ref, vp_ref, loss_ref):
    Bb, H = act_ref.shape[1], act_ref.shape[2]   # batch block, hidden
    H2 = 2 * H
    half = H // 2

    def vec(i):                      # [1, H] f32 row (left half of the pack)
        return vp_ref[i:i + 1, 0:H]

    def vec_wide(i):                 # [1, 2H] f32 row (pre-concatenated bias)
        return vp_ref[i:i + 1, :]

    def dot16(x, w):                 # bf16 MXU inputs, f32 accumulate
        return jnp.dot(x.astype(jnp.bfloat16), w,
                       preferred_element_type=jnp.float32)

    relu = lambda v: jnp.maximum(v, 0.0)

    def layer_norm(x, gi, bi):
        # E[x^2] - mu^2: both cross-lane reductions are independent and can
        # issue back-to-back (one fewer dependent XLU round-trip per LN).
        mu = jnp.mean(x, axis=-1, keepdims=True)
        ex2 = jnp.mean(x * x, axis=-1, keepdims=True)
        var = ex2 - mu * mu
        return (x - mu) * jax.lax.rsqrt(var + 1e-5) * vec(gi) + vec(bi)

    x0, cond, eps = act_ref[A_X0], act_ref[A_COND], act_ref[A_EPS]
    scal = act_ref[A_SCAL]                          # per-row scalars in lanes 0..2
    sab = scal[:, S_SAB:S_SAB + 1]                  # [Bb, 1]
    somab = scal[:, S_SOMAB:S_SOMAB + 1]
    tval = scal[:, S_T:S_T + 1]

    # ---- forward diffusion: x_t = sqrt(abar[t]) * x0 + sqrt(1-abar[t]) * eps
    x_t = sab * x0 + somab * eps

    # ---- sinusoidal time embedding: concat([sin(t*invf), cos(t*invf)]) as a
    #      per-lane select (invf pre-tiled to [1,H] host-side, no exp/log here).
    lane = jax.lax.broadcasted_iota(jnp.int32, (1, H), 1)
    invf = jnp.broadcast_to(vec(V_INVF), (Bb, H))
    ang = tval * invf
    t_emb_raw = jnp.where(lane < half, jnp.sin(ang), jnp.cos(ang))

    # ---- masks shared by the two row-stacked block-diagonal stages
    row2 = jax.lax.broadcasted_iota(jnp.int32, (2 * Bb, H2), 0)
    col2 = jax.lax.broadcasted_iota(jnp.int32, (2 * Bb, H2), 1)
    top = row2 < Bb                  # first-branch rows
    left = col2 < H                  # first-branch columns
    keep = jnp.logical_or(jnp.logical_and(top, left),
                          jnp.logical_not(jnp.logical_or(top, left)))
    rowH = jax.lax.broadcasted_iota(jnp.int32, (2 * Bb, H), 0)
    is_top = rowH < Bb

    # ---- stage 1: time_mlp  ||  (condition_encoder -> v_proj -> out_proj)
    #      as one pair of matmuls on a row-stacked operand.
    X1 = jnp.concatenate([t_emb_raw, cond], axis=0)                 # [2Bb, H]
    Z1 = dot16(X1, wa_ref[WA_FRONT]) + vec_wide(V_BW_FRONT)         # [2Bb, 2H]
    A1 = jnp.where(top, _gelu_exact(Z1), relu(Z1))                  # GELU / ReLU
    A1 = jnp.where(keep, A1, 0.0)                                   # diag blocks
    Y1 = dot16(A1, wb_ref[WB_FRONT2]) + jnp.where(is_top, vec(V_B_TM1),
                                                  vec(V_B_CEF))     # [2Bb, H]
    t_emb = Y1[0:Bb, :]              # time_mlp output
    mid_in = Y1[Bb:2 * Bb, :]        # out_proj(v_proj(condition_encoder(cond)))

    # ---- stage 2: down1  ||  mid_block fused the same way (both ReLU).
    #      down3/norm3/q_proj/k_proj only feed the attention query; softmax over
    #      a single key is 1 regardless, so they cannot affect the loss.
    X2 = jnp.concatenate([x_t + t_emb, mid_in], axis=0)             # [2Bb, H]
    Z2 = relu(dot16(X2, wa_ref[WA_DM]) + vec_wide(V_BW_DM))         # [2Bb, 2H]
    Z2 = jnp.where(keep, Z2, 0.0)
    Y2 = dot16(Z2, wb_ref[WB_DM2]) + jnp.where(is_top, vec(V_B_D12),
                                               vec(V_B_M2))         # [2Bb, H]
    d1 = layer_norm(Y2[0:Bb, :], V_LN1G, V_LN1B)
    mid = Y2[Bb:2 * Bb, :]

    # ---- down2 + norm2
    h2 = relu(dot16(d1, wc_ref[WC_D20]) + vec(V_B_D20))
    d2 = layer_norm(dot16(h2, wc_ref[WC_D22]) + vec(V_B_D22), V_LN2G, V_LN2B)

    # ---- up path: skip-connection concat + Linear as ONE K=2H dot per block
    def up_block(a, b, w0, b0, w1, b1):
        cat = jnp.concatenate([a, b], axis=-1)                      # [Bb, 2H]
        hid = relu(dot16(cat, wb_ref[w0]) + vec(b0))
        return dot16(hid, wc_ref[w1]) + vec(b1)

    u1 = up_block(mid, d2, WB_U10, V_B_U10, WC_U12, V_B_U12)
    u2 = up_block(u1, d1, WB_U20, V_B_U20, WC_U22, V_B_U22)
    # up3.2 and final are fused host-side into WC_U3F / V_B_U3F
    pred = up_block(u2, x_t, WB_U30, V_B_U30, WC_U3F, V_B_U3F)

    # ---- per-block sum of squared errors vs the diffusion noise epsilon
    #      (mean over the full batch is finished in the wrapper).
    sse = jnp.sum(jnp.square(pred - eps))
    loss_ref[...] = sse * jnp.ones((1, LOSS_LANES), jnp.float32)


def build_raw_params(key, hidden):
    """Deterministic synthetic module parameters, [in,out] layout (y = x@W + b)."""
    H = hidden
    k1, k2, k3, k4 = jax.random.split(key, 4)
    whh = jax.random.normal(k1, (N_RAW_HH, H, H), jnp.float32) * 0.05
    bhh = jax.random.normal(k2, (N_RAW_HH, H), jnp.float32) * 0.01
    w2h = jax.random.normal(k3, (3, 2 * H, H), jnp.float32) * 0.05   # up{1,2,3}.0
    b2h = jax.random.normal(k4, (3, H), jnp.float32) * 0.01
    ln_g = jnp.ones((2, H), jnp.float32)     # norm1, norm2 gamma
    ln_b = jnp.zeros((2, H), jnp.float32)    # norm1, norm2 beta
    # down3 / norm3 / attn.{q,k}_proj intentionally omitted: they provably have
    # no effect on the forward loss (single-key softmax), see kernel comment.
    return whh, bhh, w2h, b2h, ln_g, ln_b


def pack_params(raw, hidden, mxu_dtype=jnp.bfloat16):
    """Host-side Linear fusion + packing (f32 fold math; weights cast at the end).
    Use mxu_dtype=jnp.float32 for a bit-closer parity path vs the f32 reference."""
    whh, bhh, w2h, b2h, ln_g, ln_b = raw
    H = hidden

    # (a) condition_encoder.2 -> attn.v_proj -> attn.out_proj
    w_cef = whh[R_CE1] @ whh[R_VP] @ whh[R_OP]
    b_cef = bhh[R_CE1] @ whh[R_VP] @ whh[R_OP] + bhh[R_VP] @ whh[R_OP] + bhh[R_OP]
    # (b) up3.2 -> final
    w_u3f = whh[R_U32] @ whh[R_FIN]
    b_u3f = bhh[R_U32] @ whh[R_FIN] + bhh[R_FIN]

    # [2, H, 2H]: first dots of the two fused row-stacked stages
    wa = jnp.stack([
        jnp.concatenate([whh[R_TM0], whh[R_CE0]], axis=1),   # front end
        jnp.concatenate([whh[R_D10], whh[R_M0]], axis=1),    # down1 || mid
    ], axis=0)

    # [5, 2H, H]: second dots of the fused stages + un-split up{1,2,3}.0
    wb = jnp.stack([
        jnp.concatenate([whh[R_TM1], w_cef], axis=0),
        jnp.concatenate([whh[R_D12], whh[R_M2]], axis=0),
        w2h[0], w2h[1], w2h[2],
    ], axis=0)

    # [5, H, H]
    wc = jnp.stack([whh[R_D20], whh[R_D22], whh[R_U12], whh[R_U22], w_u3f],
                   axis=0)

    invf = (1.0 / 10000.0 ** (np.arange(0, H, 2, dtype=np.float32) / H))
    invf_full = jnp.asarray(np.concatenate([invf, invf]).astype(np.float32))

    zH = jnp.zeros((H,), jnp.float32)
    padH = lambda v: jnp.concatenate([v, zH], axis=-1)   # H-wide row in lanes 0:H
    vp = jnp.stack([
        jnp.concatenate([bhh[R_TM0], bhh[R_CE0]], axis=-1),   # wide front bias
        jnp.concatenate([bhh[R_D10], bhh[R_M0]], axis=-1),    # wide down1/mid bias
        padH(bhh[R_TM1]), padH(b_cef),
        padH(bhh[R_D12]), padH(bhh[R_M2]),
        padH(bhh[R_D20]), padH(bhh[R_D22]),
        padH(ln_g[0]), padH(ln_b[0]), padH(ln_g[1]), padH(ln_b[1]),
        padH(b2h[0]), padH(bhh[R_U12]), padH(b2h[1]), padH(bhh[R_U22]),
        padH(b2h[2]), padH(b_u3f),
        padH(invf_full),
    ], axis=0)                                               # [N_V, 2H] f32

    return (wa.astype(mxu_dtype), wb.astype(mxu_dtype), wc.astype(mxu_dtype),
            vp.astype(jnp.float32))


def conditional_diffusion_loss(x0, cond, eps, t, packed):
    wa, wb, wc, vp = packed
    B, H = x0.shape

    # schedule gather by t (tables are module-level constants); the three per-row
    # scalars travel as lanes 0..2 of one extra activation plane (no [B,H]
    # broadcasts on the host, no extra DMA planes).
    sab = jnp.asarray(_SQRT_AB)[t]
    somab = jnp.asarray(_SQRT_OMAB)[t]
    tf = t.astype(jnp.float32)
    scal = jnp.zeros((B, H), jnp.float32)
    scal = scal.at[:, S_SAB].set(sab).at[:, S_SOMAB].set(somab).at[:, S_T].set(tf)
    act = jnp.stack([x0, cond, eps, scal], axis=0)           # [4, B, H]

    # batch grid: blocks of up to 8 rows, sharded across TensorCores (v7x) via
    # dimension_semantics=("parallel",).  At B=2 the grid is (1,).
    b_blk = B if B <= 8 else 8
    assert B % b_blk == 0, "batch must be a multiple of the batch block"
    nblk = B // b_blk

    grid_spec = pltpu.PrefetchScalarGridSpec(
        num_scalar_prefetch=0,
        grid=(nblk,),
        in_specs=[
            pl.BlockSpec((4, b_blk, H), lambda i: (0, i, 0)),
            pl.BlockSpec(wa.shape, lambda i: (0, 0, 0)),
            pl.BlockSpec(wb.shape, lambda i: (0, 0, 0)),
            pl.BlockSpec(wc.shape, lambda i: (0, 0, 0)),
            pl.BlockSpec(vp.shape, lambda i: (0, 0)),
        ],
        out_specs=pl.BlockSpec((1, LOSS_LANES), lambda i: (i, 0)),
    )
    sse = pl.pallas_call(
        diffusion_kernel,
        out_shape=jax.ShapeDtypeStruct((nblk, LOSS_LANES), jnp.float32),
        grid_spec=grid_spec,
        compiler_params=pltpu.CompilerParams(
            dimension_semantics=("parallel",)),
    )(act, wa, wb, wc, vp)

    # finish the MSE: sum of per-block SSE partials / (B * H)
    return jnp.sum(sse[:, 0]) / (B * H)


if __name__ == "__main__":
    key = jax.random.PRNGKey(0)
    k_x, k_c, k_e, k_t, k_p = jax.random.split(key, 5)

    # stand-ins for drugnet.get_patient_hist_rep outputs (external encoder)
    x0 = jax.random.normal(k_x, (BATCH, HIDDEN), jnp.float32)
    condition = jax.random.normal(k_c, (BATCH, HIDDEN), jnp.float32)
    # diffusion noise (torch.randn_like) and timestep draw (torch.randint)
    epsilon = jax.random.normal(k_e, (BATCH, HIDDEN), jnp.float32)
    t = jax.random.randint(k_t, (BATCH,), 0, TIME_STEPS, dtype=jnp.int32)

    packed = pack_params(build_raw_params(k_p, HIDDEN), HIDDEN)

    loss = jax.jit(conditional_diffusion_loss)(x0, condition, epsilon, t, packed)
    jax.block_until_ready(loss)
    assert loss.shape == () and bool(jnp.isfinite(loss))
    print("KERNEL_OK")
</pallas_src>

<mosaic_0001>
module attributes {stable_mosaic.version = 11 : i64} {
  func.func @diffusion_kernel(%arg0: i32, %arg1: memref<4x2x32xf32, #tpu.memory_space<vmem>>, %arg2: memref<2x32x64xbf16, #tpu.memory_space<vmem>>, %arg3: memref<5x64x32xbf16, #tpu.memory_space<vmem>>, %arg4: memref<5x32x32xbf16, #tpu.memory_space<vmem>>, %arg5: memref<19x64xf32, #tpu.memory_space<vmem>>, %arg6: memref<1x128xf32, #tpu.memory_space<vmem>>) attributes {dimension_semantics = [#tpu.dimension_semantics<parallel>], iteration_bounds = array<i64: 1>, scalar_prefetch = 0 : i64, scratch_operands = 0 : i64, tpu.core_type = #tpu.core_type<tc>, window_params = [{transform_indices = @transform_0, window_bounds = array<i64: 4, 2, 32>}, {pipeline_mode = #tpu.pipeline_mode<synchronous>, transform_indices = @transform_1, window_bounds = array<i64: 2, 32, 64>}, {pipeline_mode = #tpu.pipeline_mode<synchronous>, transform_indices = @transform_2, window_bounds = array<i64: 5, 64, 32>}, {pipeline_mode = #tpu.pipeline_mode<synchronous>, transform_indices = @transform_3, window_bounds = array<i64: 5, 32, 32>}, {pipeline_mode = #tpu.pipeline_mode<synchronous>, transform_indices = @transform_4, window_bounds = array<i64: 19, 64>}, {transform_indices = @transform_5, window_bounds = array<i64: 1, 128>}]} {
    %c0 = arith.constant 0 : index
    %c0_0 = arith.constant 0 : index
    %c0_1 = arith.constant 0 : index
    %0 = vector.load %arg1[%c0, %c0_0, %c0_1] : memref<4x2x32xf32, #tpu.memory_space<vmem>>, vector<1x2x32xf32>
    %1 = vector.shape_cast %0 : vector<1x2x32xf32> to vector<2x32xf32>
    %c1 = arith.constant 1 : index
    %c0_2 = arith.constant 0 : index
    %c0_3 = arith.constant 0 : index
    %2 = vector.load %arg1[%c1, %c0_2, %c0_3] : memref<4x2x32xf32, #tpu.memory_space<vmem>>, vector<1x2x32xf32>
    %3 = vector.shape_cast %2 : vector<1x2x32xf32> to vector<2x32xf32>
    %c2 = arith.constant 2 : index
    %c0_4 = arith.constant 0 : index
    %c0_5 = arith.constant 0 : index
    %4 = vector.load %arg1[%c2, %c0_4, %c0_5] : memref<4x2x32xf32, #tpu.memory_space<vmem>>, vector<1x2x32xf32>
    %5 = vector.shape_cast %4 : vector<1x2x32xf32> to vector<2x32xf32>
    %c3 = arith.constant 3 : index
    %c0_6 = arith.constant 0 : index
    %c0_7 = arith.constant 0 : index
    %6 = vector.load %arg1[%c3, %c0_6, %c0_7] : memref<4x2x32xf32, #tpu.memory_space<vmem>>, vector<1x2x32xf32>
    %7 = vector.shape_cast %6 : vector<1x2x32xf32> to vector<2x32xf32>
    %8 = vector.extract_strided_slice %7 {offsets = [0, 0], sizes = [2, 1], strides = [1, 1]} : vector<2x32xf32> to vector<2x1xf32>
    %9 = vector.extract_strided_slice %7 {offsets = [0, 1], sizes = [2, 1], strides = [1, 1]} : vector<2x32xf32> to vector<2x1xf32>
    %10 = vector.extract_strided_slice %7 {offsets = [0, 2], sizes = [2, 1], strides = [1, 1]} : vector<2x32xf32> to vector<2x1xf32>
    %11 = vector.broadcast %8 : vector<2x1xf32> to vector<2x32xf32>
    %12 = arith.mulf %11, %1 : vector<2x32xf32>
    %13 = vector.broadcast %9 : vector<2x1xf32> to vector<2x32xf32>
    %14 = arith.mulf %13, %5 : vector<2x32xf32>
    %15 = arith.addf %12, %14 : vector<2x32xf32>
    %16 = tpu.iota {dimensions = array<i32: 1>} : vector<1x32xi32>
    %c18 = arith.constant 18 : index
    %c0_8 = arith.constant 0 : index
    %17 = vector.load %arg5[%c18, %c0_8] : memref<19x64xf32, #tpu.memory_space<vmem>>, vector<1x32xf32>
    %18 = vector.shape_cast %17 : vector<1x32xf32> to vector<1x32xf32>
    %19 = vector.broadcast %18 : vector<1x32xf32> to vector<2x32xf32>
    %20 = vector.broadcast %10 : vector<2x1xf32> to vector<2x32xf32>
    %21 = arith.mulf %20, %19 : vector<2x32xf32>
    %c16_i32 = arith.constant 16 : i32
    %22 = vector.broadcast %c16_i32 : i32 to vector<1x32xi32>
    %23 = arith.cmpi slt, %16, %22 : vector<1x32xi32>
    %24 = math.sin %21 : vector<2x32xf32>
    %25 = math.cos %21 : vector<2x32xf32>
    %26 = vector.shape_cast %23 : vector<1x32xi1> to vector<1x32xi1>
    %27 = vector.broadcast %26 : vector<1x32xi1> to vector<2x32xi1>
    %28 = arith.select %27, %24, %25 : vector<2x32xi1>, vector<2x32xf32>
    %29 = tpu.iota {dimensions = array<i32: 0>} : vector<4x64xi32>
    %30 = tpu.iota {dimensions = array<i32: 1>} : vector<4x64xi32>
    %c2_i32 = arith.constant 2 : i32
    %31 = vector.broadcast %c2_i32 : i32 to vector<4x64xi32>
    %32 = arith.cmpi slt, %29, %31 : vector<4x64xi32>
    %c32_i32 = arith.constant 32 : i32
    %33 = vector.broadcast %c32_i32 : i32 to vector<4x64xi32>
    %34 = arith.cmpi slt, %30, %33 : vector<4x64xi32>
    %35 = arith.andi %32, %34 : vector<4x64xi1>
    %36 = arith.ori %32, %34 : vector<4x64xi1>
    %cst = arith.constant dense<true> : vector<4x64xi1>
    %37 = arith.xori %36, %cst : vector<4x64xi1>
    %38 = arith.ori %35, %37 : vector<4x64xi1>
    %39 = tpu.iota {dimensions = array<i32: 0>} : vector<4x32xi32>
    %c2_i32_9 = arith.constant 2 : i32
    %40 = vector.broadcast %c2_i32_9 : i32 to vector<4x32xi32>
    %41 = arith.cmpi slt, %39, %40 : vector<4x32xi32>
    %42 = tpu.concatenate %28, %3 in 0 : vector<2x32xf32>, vector<2x32xf32> -> vector<4x32xf32>
    %c0_10 = arith.constant 0 : index
    %c0_11 = arith.constant 0 : index
    %c0_12 = arith.constant 0 : index
    %43 = vector.load %arg2[%c0_10, %c0_11, %c0_12] : memref<2x32x64xbf16, #tpu.memory_space<vmem>>, vector<1x32x64xbf16>
    %44 = vector.shape_cast %43 : vector<1x32x64xbf16> to vector<32x64xbf16>
    %45 = arith.truncf %42 : vector<4x32xf32> to vector<4x32xbf16>
    %cst_13 = arith.constant dense<0.000000e+00> : vector<4x64xf32>
    %46 = tpu.matmul %45, %44, %cst_13 {dimension_numbers = #tpu.dot_dimension_numbers<[1], [0], [0], [1], [0, 0, 1, 1], [], []>} : vector<4x32xbf16>, vector<32x64xbf16>, vector<4x64xf32> -> vector<4x64xf32>
    %c0_14 = arith.constant 0 : index
    %c0_15 = arith.constant 0 : index
    %47 = vector.load %arg5[%c0_14, %c0_15] : memref<19x64xf32, #tpu.memory_space<vmem>>, vector<1x64xf32>
    %48 = vector.broadcast %47 : vector<1x64xf32> to vector<4x64xf32>
    %49 = arith.addf %46, %48 : vector<4x64xf32>
    %cst_16 = arith.constant 5.000000e-01 : f32
    %50 = vector.broadcast %cst_16 : f32 to vector<4x64xf32>
    %51 = arith.mulf %50, %49 : vector<4x64xf32>
    %cst_17 = arith.constant 0.707106769 : f32
    %52 = vector.broadcast %cst_17 : f32 to vector<4x64xf32>
    %53 = arith.mulf %49, %52 : vector<4x64xf32>
    %cst_18 = arith.constant 0.000000e+00 : f32
    %54 = vector.broadcast %cst_18 : f32 to vector<4x64xf32>
    %55 = arith.cmpf oge, %53, %54 : vector<4x64xf32>
    %cst_19 = arith.constant 1.000000e+00 : f32
    %cst_20 = arith.constant -1.000000e+00 : f32
    %56 = vector.broadcast %cst_19 : f32 to vector<4x64xf32>
    %57 = vector.broadcast %cst_20 : f32 to vector<4x64xf32>
    %58 = arith.select %55, %56, %57 : vector<4x64xi1>, vector<4x64xf32>
    %59 = math.absf %53 : vector<4x64xf32>
    %cst_21 = arith.constant 0.327591091 : f32
    %60 = vector.broadcast %cst_21 : f32 to vector<4x64xf32>
    %61 = arith.mulf %60, %59 : vector<4x64xf32>
    %cst_22 = arith.constant 1.000000e+00 : f32
    %62 = vector.broadcast %cst_22 : f32 to vector<4x64xf32>
    %63 = arith.addf %62, %61 : vector<4x64xf32>
    %cst_23 = arith.constant 1.000000e+00 : f32
    %64 = vector.broadcast %cst_23 : f32 to vector<4x64xf32>
    %65 = arith.divf %64, %63 : vector<4x64xf32>
    %cst_24 = arith.constant 1.06140542 : f32
    %66 = vector.broadcast %cst_24 : f32 to vector<4x64xf32>
    %67 = arith.mulf %66, %65 : vector<4x64xf32>
    %cst_25 = arith.constant -1.45315206 : f32
    %68 = vector.broadcast %cst_25 : f32 to vector<4x64xf32>
    %69 = arith.addf %67, %68 : vector<4x64xf32>
    %70 = arith.mulf %69, %65 : vector<4x64xf32>
    %cst_26 = arith.constant 1.42141378 : f32
    %71 = vector.broadcast %cst_26 : f32 to vector<4x64xf32>
    %72 = arith.addf %70, %71 : vector<4x64xf32>
    %73 = arith.mulf %72, %65 : vector<4x64xf32>
    %cst_27 = arith.constant -0.284496725 : f32
    %74 = vector.broadcast %cst_27 : f32 to vector<4x64xf32>
    %75 = arith.addf %73, %74 : vector<4x64xf32>
    %76 = arith.mulf %75, %65 : vector<4x64xf32>
    %cst_28 = arith.constant 0.254829586 : f32
    %77 = vector.broadcast %cst_28 : f32 to vector<4x64xf32>
    %78 = arith.addf %76, %77 : vector<4x64xf32>
    %79 = arith.mulf %78, %65 : vector<4x64xf32>
    %cst_29 = arith.constant 0.000000e+00 : f32
    %80 = vector.broadcast %cst_29 : f32 to vector<4x64xf32>
    %81 = arith.subf %80, %59 : vector<4x64xf32>
    %82 = arith.mulf %81, %59 : vector<4x64xf32>
    %83 = math.exp %82 : vector<4x64xf32>
    %84 = arith.mulf %79, %83 : vector<4x64xf32>
    %cst_30 = arith.constant 1.000000e+00 : f32
    %85 = vector.broadcast %cst_30 : f32 to vector<4x64xf32>
    %86 = arith.subf %85, %84 : vector<4x64xf32>
    %87 = arith.mulf %58, %86 : vector<4x64xf32>
    %cst_31 = arith.constant 1.000000e+00 : f32
    %88 = vector.broadcast %cst_31 : f32 to vector<4x64xf32>
    %89 = arith.addf %88, %87 : vector<4x64xf32>
    %90 = arith.mulf %51, %89 : vector<4x64xf32>
    %cst_32 = arith.constant 0.000000e+00 : f32
    %91 = vector.broadcast %cst_32 : f32 to vector<4x64xf32>
    %92 = arith.maximumf %49, %91 : vector<4x64xf32>
    %93 = arith.select %32, %90, %92 : vector<4x64xi1>, vector<4x64xf32>
    %cst_33 = arith.constant 0.000000e+00 : f32
    %94 = vector.broadcast %cst_33 : f32 to vector<4x64xf32>
    %95 = arith.select %38, %93, %94 : vector<4x64xi1>, vector<4x64xf32>
    %c0_34 = arith.constant 0 : index
    %c0_35 = arith.constant 0 : index
    %c0_36 = arith.constant 0 : index
    %96 = vector.load %arg3[%c0_34, %c0_35, %c0_36] : memref<5x64x32xbf16, #tpu.memory_space<vmem>>, vector<1x64x32xbf16>
    %97 = vector.shape_cast %96 : vector<1x64x32xbf16> to vector<64x32xbf16>
    %98 = arith.truncf %95 : vector<4x64xf32> to vector<4x64xbf16>
    %cst_37 = arith.constant dense<0.000000e+00> : vector<4x32xf32>
    %99 = tpu.matmul %98, %97, %cst_37 {dimension_numbers = #tpu.dot_dimension_numbers<[1], [0], [0], [1], [0, 0, 1, 1], [], []>} : vector<4x64xbf16>, vector<64x32xbf16>, vector<4x32xf32> -> vector<4x32xf32>
    %c2_38 = arith.constant 2 : index
    %c0_39 = arith.constant 0 : index
    %100 = vector.load %arg5[%c2_38, %c0_39] : memref<19x64xf32, #tpu.memory_space<vmem>>, vector<1x32xf32>
    %c3_40 = arith.constant 3 : index
    %c0_41 = arith.constant 0 : index
    %101 = vector.load %arg5[%c3_40, %c0_41] : memref<19x64xf32, #tpu.memory_space<vmem>>, vector<1x32xf32>
    %102 = vector.shape_cast %100 : vector<1x32xf32> to vector<1x32xf32>
    %103 = vector.broadcast %102 : vector<1x32xf32> to vector<4x32xf32>
    %104 = vector.shape_cast %101 : vector<1x32xf32> to vector<1x32xf32>
    %105 = vector.broadcast %104 : vector<1x32xf32> to vector<4x32xf32>
    %106 = arith.select %41, %103, %105 : vector<4x32xi1>, vector<4x32xf32>
    %107 = arith.addf %99, %106 : vector<4x32xf32>
    %108 = vector.extract_strided_slice %107 {offsets = [0, 0], sizes = [2, 32], strides = [1, 1]} : vector<4x32xf32> to vector<2x32xf32>
    %109 = vector.extract_strided_slice %107 {offsets = [2, 0], sizes = [2, 32], strides = [1, 1]} : vector<4x32xf32> to vector<2x32xf32>
    %110 = arith.addf %15, %108 : vector<2x32xf32>
    %111 = tpu.concatenate %110, %109 in 0 : vector<2x32xf32>, vector<2x32xf32> -> vector<4x32xf32>
    %c1_42 = arith.constant 1 : index
    %c0_43 = arith.constant 0 : index
    %c0_44 = arith.constant 0 : index
    %112 = vector.load %arg2[%c1_42, %c0_43, %c0_44] : memref<2x32x64xbf16, #tpu.memory_space<vmem>>, vector<1x32x64xbf16>
    %113 = vector.shape_cast %112 : vector<1x32x64xbf16> to vector<32x64xbf16>
    %114 = arith.truncf %111 : vector<4x32xf32> to vector<4x32xbf16>
    %cst_45 = arith.constant dense<0.000000e+00> : vector<4x64xf32>
    %115 = tpu.matmul %114, %113, %cst_45 {dimension_numbers = #tpu.dot_dimension_numbers<[1], [0], [0], [1], [0, 0, 1, 1], [], []>} : vector<4x32xbf16>, vector<32x64xbf16>, vector<4x64xf32> -> vector<4x64xf32>
    %c1_46 = arith.constant 1 : index
    %c0_47 = arith.constant 0 : index
    %116 = vector.load %arg5[%c1_46, %c0_47] : memref<19x64xf32, #tpu.memory_space<vmem>>, vector<1x64xf32>
    %117 = vector.broadcast %116 : vector<1x64xf32> to vector<4x64xf32>
    %118 = arith.addf %115, %117 : vector<4x64xf32>
    %cst_48 = arith.constant 0.000000e+00 : f32
    %119 = vector.broadcast %cst_48 : f32 to vector<4x64xf32>
    %120 = arith.maximumf %118, %119 : vector<4x64xf32>
    %cst_49 = arith.constant 0.000000e+00 : f32
    %121 = vector.broadcast %cst_49 : f32 to vector<4x64xf32>
    %122 = arith.select %38, %120, %121 : vector<4x64xi1>, vector<4x64xf32>
    %c1_50 = arith.constant 1 : index
    %c0_51 = arith.constant 0 : index
    %c0_52 = arith.constant 0 : index
    %123 = vector.load %arg3[%c1_50, %c0_51, %c0_52] : memref<5x64x32xbf16, #tpu.memory_space<vmem>>, vector<1x64x32xbf16>
    %124 = vector.shape_cast %123 : vector<1x64x32xbf16> to vector<64x32xbf16>
    %125 = arith.truncf %122 : vector<4x64xf32> to vector<4x64xbf16>
    %cst_53 = arith.constant dense<0.000000e+00> : vector<4x32xf32>
    %126 = tpu.matmul %125, %124, %cst_53 {dimension_numbers = #tpu.dot_dimension_numbers<[1], [0], [0], [1], [0, 0, 1, 1], [], []>} : vector<4x64xbf16>, vector<64x32xbf16>, vector<4x32xf32> -> vector<4x32xf32>
    %c4 = arith.constant 4 : index
    %c0_54 = arith.constant 0 : index
    %127 = vector.load %arg5[%c4, %c0_54] : memref<19x64xf32, #tpu.memory_space<vmem>>, vector<1x32xf32>
    %c5 = arith.constant 5 : index
    %c0_55 = arith.constant 0 : index
    %128 = vector.load %arg5[%c5, %c0_55] : memref<19x64xf32, #tpu.memory_space<vmem>>, vector<1x32xf32>
    %129 = vector.shape_cast %127 : vector<1x32xf32> to vector<1x32xf32>
    %130 = vector.broadcast %129 : vector<1x32xf32> to vector<4x32xf32>
    %131 = vector.shape_cast %128 : vector<1x32xf32> to vector<1x32xf32>
    %132 = vector.broadcast %131 : vector<1x32xf32> to vector<4x32xf32>
    %133 = arith.select %41, %130, %132 : vector<4x32xi1>, vector<4x32xf32>
    %134 = arith.addf %126, %133 : vector<4x32xf32>
    %135 = vector.extract_strided_slice %134 {offsets = [0, 0], sizes = [2, 32], strides = [1, 1]} : vector<4x32xf32> to vector<2x32xf32>
    %cst_56 = arith.constant dense<0.000000e+00> : vector<2xf32>
    %136 = vector.multi_reduction <add>, %135, %cst_56 [1] : vector<2x32xf32> to vector<2xf32>
    %137 = vector.shape_cast %136 : vector<2xf32> to vector<2x1xf32>
    %cst_57 = arith.constant 3.200000e+01 : f32
    %138 = vector.broadcast %cst_57 : f32 to vector<2x1xf32>
    %139 = arith.divf %137, %138 : vector<2x1xf32>
    %140 = arith.mulf %135, %135 : vector<2x32xf32>
    %cst_58 = arith.constant dense<0.000000e+00> : vector<2xf32>
    %141 = vector.multi_reduction <add>, %140, %cst_58 [1] : vector<2x32xf32> to vector<2xf32>
    %142 = vector.shape_cast %141 : vector<2xf32> to vector<2x1xf32>
    %cst_59 = arith.constant 3.200000e+01 : f32
    %143 = vector.broadcast %cst_59 : f32 to vector<2x1xf32>
    %144 = arith.divf %142, %143 : vector<2x1xf32>
    %145 = arith.mulf %139, %139 : vector<2x1xf32>
    %146 = arith.subf %144, %145 : vector<2x1xf32>
    %147 = vector.broadcast %139 : vector<2x1xf32> to vector<2x32xf32>
    %148 = arith.subf %135, %147 : vector<2x32xf32>
    %cst_60 = arith.constant 9.99999974E-6 : f32
    %149 = vector.broadcast %cst_60 : f32 to vector<2x1xf32>
    %150 = arith.addf %146, %149 : vector<2x1xf32>
    %151 = math.rsqrt %150 : vector<2x1xf32>
    %152 = vector.broadcast %151 : vector<2x1xf32> to vector<2x32xf32>
    %153 = arith.mulf %148, %152 : vector<2x32xf32>
    %c8 = arith.constant 8 : index
    %c0_61 = arith.constant 0 : index
    %154 = vector.load %arg5[%c8, %c0_61] : memref<19x64xf32, #tpu.memory_space<vmem>>, vector<1x32xf32>
    %155 = vector.broadcast %154 : vector<1x32xf32> to vector<2x32xf32>
    %156 = arith.mulf %153, %155 : vector<2x32xf32>
    %c9 = arith.constant 9 : index
    %c0_62 = arith.constant 0 : index
    %157 = vector.load %arg5[%c9, %c0_62] : memref<19x64xf32, #tpu.memory_space<vmem>>, vector<1x32xf32>
    %158 = vector.broadcast %157 : vector<1x32xf32> to vector<2x32xf32>
    %159 = arith.addf %156, %158 : vector<2x32xf32>
    %160 = vector.extract_strided_slice %134 {offsets = [2, 0], sizes = [2, 32], strides = [1, 1]} : vector<4x32xf32> to vector<2x32xf32>
    %c0_63 = arith.constant 0 : index
    %c0_64 = arith.constant 0 : index
    %c0_65 = arith.constant 0 : index
    %161 = vector.load %arg4[%c0_63, %c0_64, %c0_65] : memref<5x32x32xbf16, #tpu.memory_space<vmem>>, vector<1x32x32xbf16>
    %162 = vector.shape_cast %161 : vector<1x32x32xbf16> to vector<32x32xbf16>
    %163 = arith.truncf %159 : vector<2x32xf32> to vector<2x32xbf16>
    %cst_66 = arith.constant dense<0.000000e+00> : vector<2x32xf32>
    %164 = tpu.matmul %163, %162, %cst_66 {dimension_numbers = #tpu.dot_dimension_numbers<[1], [0], [0], [1], [0, 0, 1, 1], [], []>} : vector<2x32xbf16>, vector<32x32xbf16>, vector<2x32xf32> -> vector<2x32xf32>
    %c6 = arith.constant 6 : index
    %c0_67 = arith.constant 0 : index
    %165 = vector.load %arg5[%c6, %c0_67] : memref<19x64xf32, #tpu.memory_space<vmem>>, vector<1x32xf32>
    %166 = vector.broadcast %165 : vector<1x32xf32> to vector<2x32xf32>
    %167 = arith.addf %164, %166 : vector<2x32xf32>
    %cst_68 = arith.constant 0.000000e+00 : f32
    %168 = vector.broadcast %cst_68 : f32 to vector<2x32xf32>
    %169 = arith.maximumf %167, %168 : vector<2x32xf32>
    %c1_69 = arith.constant 1 : index
    %c0_70 = arith.constant 0 : index
    %c0_71 = arith.constant 0 : index
    %170 = vector.load %arg4[%c1_69, %c0_70, %c0_71] : memref<5x32x32xbf16, #tpu.memory_space<vmem>>, vector<1x32x32xbf16>
    %171 = vector.shape_cast %170 : vector<1x32x32xbf16> to vector<32x32xbf16>
    %172 = arith.truncf %169 : vector<2x32xf32> to vector<2x32xbf16>
    %cst_72 = arith.constant dense<0.000000e+00> : vector<2x32xf32>
    %173 = tpu.matmul %172, %171, %cst_72 {dimension_numbers = #tpu.dot_dimension_numbers<[1], [0], [0], [1], [0, 0, 1, 1], [], []>} : vector<2x32xbf16>, vector<32x32xbf16>, vector<2x32xf32> -> vector<2x32xf32>
    %c7 = arith.constant 7 : index
    %c0_73 = arith.constant 0 : index
    %174 = vector.load %arg5[%c7, %c0_73] : memref<19x64xf32, #tpu.memory_space<vmem>>, vector<1x32xf32>
    %175 = vector.broadcast %174 : vector<1x32xf32> to vector<2x32xf32>
    %176 = arith.addf %173, %175 : vector<2x32xf32>
    %cst_74 = arith.constant dense<0.000000e+00> : vector<2xf32>
    %177 = vector.multi_reduction <add>, %176, %cst_74 [1] : vector<2x32xf32> to vector<2xf32>
    %178 = vector.shape_cast %177 : vector<2xf32> to vector<2x1xf32>
    %cst_75 = arith.constant 3.200000e+01 : f32
    %179 = vector.broadcast %cst_75 : f32 to vector<2x1xf32>
    %180 = arith.divf %178, %179 : vector<2x1xf32>
    %181 = arith.mulf %176, %176 : vector<2x32xf32>
    %cst_76 = arith.constant dense<0.000000e+00> : vector<2xf32>
    %182 = vector.multi_reduction <add>, %181, %cst_76 [1] : vector<2x32xf32> to vector<2xf32>
    %183 = vector.shape_cast %182 : vector<2xf32> to vector<2x1xf32>
    %cst_77 = arith.constant 3.200000e+01 : f32
    %184 = vector.broadcast %cst_77 : f32 to vector<2x1xf32>
    %185 = arith.divf %183, %184 : vector<2x1xf32>
    %186 = arith.mulf %180, %180 : vector<2x1xf32>
    %187 = arith.subf %185, %186 : vector<2x1xf32>
    %188 = vector.broadcast %180 : vector<2x1xf32> to vector<2x32xf32>
    %189 = arith.subf %176, %188 : vector<2x32xf32>
    %cst_78 = arith.constant 9.99999974E-6 : f32
    %190 = vector.broadcast %cst_78 : f32 to vector<2x1xf32>
    %191 = arith.addf %187, %190 : vector<2x1xf32>
    %192 = math.rsqrt %191 : vector<2x1xf32>
    %193 = vector.broadcast %192 : vector<2x1xf32> to vector<2x32xf32>
    %194 = arith.mulf %189, %193 : vector<2x32xf32>
    %c10 = arith.constant 10 : index
    %c0_79 = arith.constant 0 : index
    %195 = vector.load %arg5[%c10, %c0_79] : memref<19x64xf32, #tpu.memory_space<vmem>>, vector<1x32xf32>
    %196 = vector.broadcast %195 : vector<1x32xf32> to vector<2x32xf32>
    %197 = arith.mulf %194, %196 : vector<2x32xf32>
    %c11 = arith.constant 11 : index
    %c0_80 = arith.constant 0 : index
    %198 = vector.load %arg5[%c11, %c0_80] : memref<19x64xf32, #tpu.memory_space<vmem>>, vector<1x32xf32>
    %199 = vector.broadcast %198 : vector<1x32xf32> to vector<2x32xf32>
    %200 = arith.addf %197, %199 : vector<2x32xf32>
    %201 = tpu.concatenate %160, %200 in 1 : vector<2x32xf32>, vector<2x32xf32> -> vector<2x64xf32>
    %c2_81 = arith.constant 2 : index
    %c0_82 = arith.constant 0 : index
    %c0_83 = arith.constant 0 : index
    %202 = vector.load %arg3[%c2_81, %c0_82, %c0_83] : memref<5x64x32xbf16, #tpu.memory_space<vmem>>, vector<1x64x32xbf16>
    %203 = vector.shape_cast %202 : vector<1x64x32xbf16> to vector<64x32xbf16>
    %204 = arith.truncf %201 : vector<2x64xf32> to vector<2x64xbf16>
    %cst_84 = arith.constant dense<0.000000e+00> : vector<2x32xf32>
    %205 = tpu.matmul %204, %203, %cst_84 {dimension_numbers = #tpu.dot_dimension_numbers<[1], [0], [0], [1], [0, 0, 1, 1], [], []>} : vector<2x64xbf16>, vector<64x32xbf16>, vector<2x32xf32> -> vector<2x32xf32>
    %c12 = arith.constant 12 : index
    %c0_85 = arith.constant 0 : index
    %206 = vector.load %arg5[%c12, %c0_85] : memref<19x64xf32, #tpu.memory_space<vmem>>, vector<1x32xf32>
    %207 = vector.broadcast %206 : vector<1x32xf32> to vector<2x32xf32>
    %208 = arith.addf %205, %207 : vector<2x32xf32>
    %cst_86 = arith.constant 0.000000e+00 : f32
    %209 = vector.broadcast %cst_86 : f32 to vector<2x32xf32>
    %210 = arith.maximumf %208, %209 : vector<2x32xf32>
    %c2_87 = arith.constant 2 : index
    %c0_88 = arith.constant 0 : index
    %c0_89 = arith.constant 0 : index
    %211 = vector.load %arg4[%c2_87, %c0_88, %c0_89] : memref<5x32x32xbf16, #tpu.memory_space<vmem>>, vector<1x32x32xbf16>
    %212 = vector.shape_cast %211 : vector<1x32x32xbf16> to vector<32x32xbf16>
    %213 = arith.truncf %210 : vector<2x32xf32> to vector<2x32xbf16>
    %cst_90 = arith.constant dense<0.000000e+00> : vector<2x32xf32>
    %214 = tpu.matmul %213, %212, %cst_90 {dimension_numbers = #tpu.dot_dimension_numbers<[1], [0], [0], [1], [0, 0, 1, 1], [], []>} : vector<2x32xbf16>, vector<32x32xbf16>, vector<2x32xf32> -> vector<2x32xf32>
    %c13 = arith.constant 13 : index
    %c0_91 = arith.constant 0 : index
    %215 = vector.load %arg5[%c13, %c0_91] : memref<19x64xf32, #tpu.memory_space<vmem>>, vector<1x32xf32>
    %216 = vector.broadcast %215 : vector<1x32xf32> to vector<2x32xf32>
    %217 = arith.addf %214, %216 : vector<2x32xf32>
    %218 = tpu.concatenate %217, %159 in 1 : vector<2x32xf32>, vector<2x32xf32> -> vector<2x64xf32>
    %c3_92 = arith.constant 3 : index
    %c0_93 = arith.constant 0 : index
    %c0_94 = arith.constant 0 : index
    %219 = vector.load %arg3[%c3_92, %c0_93, %c0_94] : memref<5x64x32xbf16, #tpu.memory_space<vmem>>, vector<1x64x32xbf16>
    %220 = vector.shape_cast %219 : vector<1x64x32xbf16> to vector<64x32xbf16>
    %221 = arith.truncf %218 : vector<2x64xf32> to vector<2x64xbf16>
    %cst_95 = arith.constant dense<0.000000e+00> : vector<2x32xf32>
    %222 = tpu.matmul %221, %220, %cst_95 {dimension_numbers = #tpu.dot_dimension_numbers<[1], [0], [0], [1], [0, 0, 1, 1], [], []>} : vector<2x64xbf16>, vector<64x32xbf16>, vector<2x32xf32> -> vector<2x32xf32>
    %c14 = arith.constant 14 : index
    %c0_96 = arith.constant 0 : index
    %223 = vector.load %arg5[%c14, %c0_96] : memref<19x64xf32, #tpu.memory_space<vmem>>, vector<1x32xf32>
    %224 = vector.broadcast %223 : vector<1x32xf32> to vector<2x32xf32>
    %225 = arith.addf %222, %224 : vector<2x32xf32>
    %cst_97 = arith.constant 0.000000e+00 : f32
    %226 = vector.broadcast %cst_97 : f32 to vector<2x32xf32>
    %227 = arith.maximumf %225, %226 : vector<2x32xf32>
    %c3_98 = arith.constant 3 : index
    %c0_99 = arith.constant 0 : index
    %c0_100 = arith.constant 0 : index
    %228 = vector.load %arg4[%c3_98, %c0_99, %c0_100] : memref<5x32x32xbf16, #tpu.memory_space<vmem>>, vector<1x32x32xbf16>
    %229 = vector.shape_cast %228 : vector<1x32x32xbf16> to vector<32x32xbf16>
    %230 = arith.truncf %227 : vector<2x32xf32> to vector<2x32xbf16>
    %cst_101 = arith.constant dense<0.000000e+00> : vector<2x32xf32>
    %231 = tpu.matmul %230, %229, %cst_101 {dimension_numbers = #tpu.dot_dimension_numbers<[1], [0], [0], [1], [0, 0, 1, 1], [], []>} : vector<2x32xbf16>, vector<32x32xbf16>, vector<2x32xf32> -> vector<2x32xf32>
    %c15 = arith.constant 15 : index
    %c0_102 = arith.constant 0 : index
    %232 = vector.load %arg5[%c15, %c0_102] : memref<19x64xf32, #tpu.memory_space<vmem>>, vector<1x32xf32>
    %233 = vector.broadcast %232 : vector<1x32xf32> to vector<2x32xf32>
    %234 = arith.addf %231, %233 : vector<2x32xf32>
    %235 = tpu.concatenate %234, %15 in 1 : vector<2x32xf32>, vector<2x32xf32> -> vector<2x64xf32>
    %c4_103 = arith.constant 4 : index
    %c0_104 = arith.constant 0 : index
    %c0_105 = arith.constant 0 : index
    %236 = vector.load %arg3[%c4_103, %c0_104, %c0_105] : memref<5x64x32xbf16, #tpu.memory_space<vmem>>, vector<1x64x32xbf16>
    %237 = vector.shape_cast %236 : vector<1x64x32xbf16> to vector<64x32xbf16>
    %238 = arith.truncf %235 : vector<2x64xf32> to vector<2x64xbf16>
    %cst_106 = arith.constant dense<0.000000e+00> : vector<2x32xf32>
    %239 = tpu.matmul %238, %237, %cst_106 {dimension_numbers = #tpu.dot_dimension_numbers<[1], [0], [0], [1], [0, 0, 1, 1], [], []>} : vector<2x64xbf16>, vector<64x32xbf16>, vector<2x32xf32> -> vector<2x32xf32>
    %c16 = arith.constant 16 : index
    %c0_107 = arith.constant 0 : index
    %240 = vector.load %arg5[%c16, %c0_107] : memref<19x64xf32, #tpu.memory_space<vmem>>, vector<1x32xf32>
    %241 = vector.broadcast %240 : vector<1x32xf32> to vector<2x32xf32>
    %242 = arith.addf %239, %241 : vector<2x32xf32>
    %cst_108 = arith.constant 0.000000e+00 : f32
    %243 = vector.broadcast %cst_108 : f32 to vector<2x32xf32>
    %244 = arith.maximumf %242, %243 : vector<2x32xf32>
    %c4_109 = arith.constant 4 : index
    %c0_110 = arith.constant 0 : index
    %c0_111 = arith.constant 0 : index
    %245 = vector.load %arg4[%c4_109, %c0_110, %c0_111] : memref<5x32x32xbf16, #tpu.memory_space<vmem>>, vector<1x32x32xbf16>
    %246 = vector.shape_cast %245 : vector<1x32x32xbf16> to vector<32x32xbf16>
    %247 = arith.truncf %244 : vector<2x32xf32> to vector<2x32xbf16>
    %cst_112 = arith.constant dense<0.000000e+00> : vector<2x32xf32>
    %248 = tpu.matmul %247, %246, %cst_112 {dimension_numbers = #tpu.dot_dimension_numbers<[1], [0], [0], [1], [0, 0, 1, 1], [], []>} : vector<2x32xbf16>, vector<32x32xbf16>, vector<2x32xf32> -> vector<2x32xf32>
    %c17 = arith.constant 17 : index
    %c0_113 = arith.constant 0 : index
    %249 = vector.load %arg5[%c17, %c0_113] : memref<19x64xf32, #tpu.memory_space<vmem>>, vector<1x32xf32>
    %250 = vector.broadcast %249 : vector<1x32xf32> to vector<2x32xf32>
    %251 = arith.addf %248, %250 : vector<2x32xf32>
    %252 = arith.subf %251, %5 : vector<2x32xf32>
    %253 = arith.mulf %252, %252 : vector<2x32xf32>
    %254 = vector.shape_cast %253 : vector<2x32xf32> to vector<1x2x32xf32>
    %cst_114 = arith.constant dense<0.000000e+00> : vector<1xf32>
    %255 = vector.multi_reduction <add>, %254, %cst_114 [1, 2] : vector<1x2x32xf32> to vector<1xf32>
    %256 = vector.shape_cast %255 : vector<1xf32> to vector<1x1x1xf32>
    %257 = vector.extract %256[0, 0, 0] : f32 from vector<1x1x1xf32>
    %cst_115 = arith.constant 1.000000e+00 : f32
    %258 = vector.broadcast %cst_115 : f32 to vector<1x128xf32>
    %259 = vector.broadcast %257 : f32 to vector<1x128xf32>
    %260 = arith.mulf %259, %258 : vector<1x128xf32>
    %c0_116 = arith.constant 0 : index
    %c0_117 = arith.constant 0 : index
    %261 = vector.load %arg6[%c0_116, %c0_117] : memref<1x128xf32, #tpu.memory_space<vmem>>, vector<1x128xf32>
    tpu.vector_store %arg6[%c0_116, %c0_117], %260 {strides = array<i32>} : memref<1x128xf32, #tpu.memory_space<vmem>>, vector<1x128xf32>,
    return
  }
  func.func @transform_0(%arg0: i32) -> (i32, i32, i32) {
    %c0_i32 = arith.constant 0 : i32
    %c0_i32_0 = arith.constant 0 : i32
    %c0_i32_1 = arith.constant 0 : i32
    return %c0_i32, %arg0, %c0_i32_0 : i32, i32, i32
  }
  func.func @transform_1(%arg0: i32) -> (i32, i32, i32) {
    %c0_i32 = arith.constant 0 : i32
    %c0_i32_0 = arith.constant 0 : i32
    %c0_i32_1 = arith.constant 0 : i32
    %c0_i32_2 = arith.constant 0 : i32
    return %c0_i32, %c0_i32_0, %c0_i32_1 : i32, i32, i32
  }
  func.func @transform_2(%arg0: i32) -> (i32, i32, i32) {
    %c0_i32 = arith.constant 0 : i32
    %c0_i32_0 = arith.constant 0 : i32
    %c0_i32_1 = arith.constant 0 : i32
    %c0_i32_2 = arith.constant 0 : i32
    return %c0_i32, %c0_i32_0, %c0_i32_1 : i32, i32, i32
  }
  func.func @transform_3(%arg0: i32) -> (i32, i32, i32) {
    %c0_i32 = arith.constant 0 : i32
    %c0_i32_0 = arith.constant 0 : i32
    %c0_i32_1 = arith.constant 0 : i32
    %c0_i32_2 = arith.constant 0 : i32
    return %c0_i32, %c0_i32_0, %c0_i32_1 : i32, i32, i32
  }
  func.func @transform_4(%arg0: i32) -> (i32, i32) {
    %c0_i32 = arith.constant 0 : i32
    %c0_i32_0 = arith.constant 0 : i32
    %c0_i32_1 = arith.constant 0 : i32
    return %c0_i32, %c0_i32_0 : i32, i32
  }
  func.func @transform_5(%arg0: i32) -> (i32, i32) {
    %c0_i32 = arith.constant 0 : i32
    %c0_i32_0 = arith.constant 0 : i32
    return %arg0, %c0_i32 : i32, i32
  }
}

</mosaic_0001>

<bundles_post_ra>
// kernel: conditional_diffusion_loss.1
= control target key start
LH: loop header
LB: loop body
LE: loop exit
PB: predicated region body
PF: predicated region fallthrough
CT: control target
= control target key end

     0   :  { %v1338_v0 = vmov 2   ;;  %v1339_v2 = vmov 0   ;;  %v1340_v17 = vmov 683565275   ;;  %v1341_v19 = vmov 2475754826   ;;  %s1707_s0 = inlined_call_operand.vmem [shape: f32[4,2,32], index: 0, kind: input, shape index: {}]   ;;  %s1708_s4 = inlined_call_operand.vmem [shape: f32[19,64], index: 4, kind: input, shape index: {}]   ;;  %s1709_s1 = inlined_call_operand.vmem [shape: bf16[2,32,64], index: 1, kind: input, shape index: {}]   ;;  %s1710_s2 = inlined_call_operand.vmem [shape: bf16[5,64,32], index: 2, kind: input, shape index: {}]   ;;  %s1711_s3 = inlined_call_operand.vmem [shape: bf16[5,32,32], index: 3, kind: input, shape index: {}]   ;;  %s1712_s5 = inlined_call_operand.vmem [shape: f32[1,128], index: 5, kind: output, shape index: {}]  }
   0x1   :  { %1305 = vset.pattern.permute.xlu0 %v1338_v0  ;;  %v1384_v1 = vld [vmem:[%s1707_s0 + $0x6] sm:$0x3]  ;;  %v1309_v3 = vld [vmem:[%s1708_s4 + $0x12] ss:$0 sm:$0xff]  ;;  %v1342_v22 = vmov 2131351028  }
   0x2   :  { %45 = vperm.xlu0 %1305, %v1384_v1   ;;  %v1343_v25 = vmov 2102212464   ;;  %v1344_v28 = vmov 920167782   ;;  %v1345_v31 = vmov 1326507024  }
   0x3   :  { %s1350_s27 = smov 32  }
   0xa   :  { %1306 = vset.pattern.permute.xlu0 %v1339_v2 }
   0xb   :  { %30 = vperm.xlu0 %1306, %v1384_v1  }
  0x13   :  { %1308 = vset.pattern.permute.xlu0 %v1338_v0 }
  0x74   :  { %v46_v4 = vpop.permute.xlu0 %45 }
  0x75   :  { %v1392_v5 = vmul.f32 %v1309_v3, %v46_v4 }
  0x77   :  { %v53_v6 = vand.u32 2139095040, %v1392_v5  ;;  %v50_v9 = vand.u32 2147483647, %v1392_v5  ;;  %vm52_vm12 = vcmp.lt.s32.totalorder %v1392_v5, 0 }
  0x79   :  { %v54_v7 = vshrl.u32 %v53_v6, 23  ;;  %v57_v11 = vand.u32 8388607, %v50_v9  ;;  %vm51_vm13 = vcmp.le.f32.partialorder %v50_v9, 0.7853982 }
  0x7b   :  { %v1050_v8 = vadd.s32 4294967169, %v54_v7  ;;  %v58_v15 = vor.u32 8388608, %v57_v11 }
  0x7d   :  { %v60_v10 = vadd.s32 1, %v1050_v8  ;;  %v1409_v38 = vshll.u32 %v58_v15, 8 }
  0x7f   :  { %vm61_vm0 = vcmp.gt.s32.totalorder %v60_v10, 0  ;;  %v99_v47 = vand.u32 65535, %v1409_v38  ;;  %v100_v48 = vshrl.u32 %v1409_v38, 16 }
  0x80   :  { %v62_v12 = vsel %vm61_vm0, %v60_v10, 0 }
  0x81   :  { %v64_v13 = vand.u32 31, %v62_v12  ;;  %v1400_v16 = vshrl.u32 %v62_v12, 5 }
  0x83   :  { %v1398_v14 = vsub.s32 32, %v64_v13  ;;  %v67_v18 = vshll.u32 %v1340_v17, %v64_v13  ;;  %v70_v20 = vshll.u32 %v1341_v19, %v64_v13  ;;  %v73_v24 = vshll.u32 %v1342_v22, %v64_v13 }
  0x84   :  { %v76_v27 = vshll.u32 %v1343_v25, %v64_v13  ;;  %v79_v30 = vshll.u32 %v1344_v28, %v64_v13  ;;  %vm82_vm1 = vcmp.lt.s32.totalorder %v1400_v16, 1  ;;  %vm85_vm2 = vcmp.lt.s32.totalorder %v1400_v16, 4 }
  0x85   :  { %v68_v21 = vshrl.u32 %v1341_v19, %v1398_v14  ;;  %v71_v23 = vshrl.u32 %v1342_v22, %v1398_v14  ;;  %v74_v26 = vshrl.u32 %v1343_v25, %v1398_v14  ;;  %v77_v29 = vshrl.u32 %v1344_v28, %v1398_v14 }
  0x86   :  { %v80_v32 = vshrl.u32 %v1345_v31, %v1398_v14  ;;  %vm84_vm3 = vcmp.lt.s32.totalorder %v1400_v16, 3  ;;  %vm83_vm4 = vcmp.lt.s32.totalorder %v1400_v16, 2  ;;  %v66_v13 = vshrl.u32 %v1340_v17, %v1398_v14  ;;  %v1257_v16 = vld [vmem:[%s1709_s1 + $0x8] sm:$0xff] }
  0x87   :  { %v69_v33 = vor.u32 %v68_v21, %v67_v18  ;;  %v72_v34 = vor.u32 %v71_v23, %v70_v20  ;;  %v75_v35 = vor.u32 %v74_v26, %v73_v24  ;;  %v78_v36 = vor.u32 %v77_v29, %v76_v27  ;;  %404 = vmatpush.bf16.msra.mxu0 %v1257_v16  ;;  %v1261_v16 = vld [vmem:[%s1710_s2 + $0x18] sm:$0xff] }
  0x88   :  { %v81_v37 = vor.u32 %v80_v32, %v79_v30  ;;  %500 = vmatpush.bf16.msra.mxu1 %v1261_v16  ;;  %v1264_v16 = vld [vmem:[%s1710_s2 + $0x20] sm:$0xff] }
  0x89   :  { %v90_v39 = vsel %vm82_vm1, %v69_v33, %v72_v34  ;;  %v94_v40 = vsel %vm82_vm1, %v72_v34, %v75_v35  ;;  %v91_v41 = vsel %vm85_vm2, %v78_v36, 920167782  ;;  %v87_v10 = vsel %vm85_vm2, %v75_v35, 2102212464 }
  0x8a   :  { %v95_v42 = vsel %vm85_vm2, %v81_v37, 1326507024  ;;  %v92_v43 = vsel %vm84_vm3, %v75_v35, %v91_v41  ;;  %v86_v22 = vsel %vm82_vm1, %v66_v13, %v69_v33  ;;  %v88_v23 = vsel %vm84_vm3, %v72_v34, %v87_v10 }
  0x8b   :  { %v96_v44 = vsel %vm84_vm3, %v78_v36, %v95_v42  ;;  %v93_v45 = vsel %vm83_vm4, %v90_v39, %v92_v43  ;;  %v89_v14 = vsel %vm83_vm4, %v86_v22, %v88_v23  ;;  %v1047_v22 = vld [vmem:[%s1707_s0 + $0x2] sm:$0x3] }
  0x8c   :  { %v97_v46 = vsel %vm83_vm4, %v94_v40, %v96_v44  ;;  %v123_v51 = vand.u32 65535, %v93_v45  ;;  %v124_v52 = vshrl.u32 %v93_v45, 16  ;;  %v143_v30 = vmul.u32 %v1409_v38, %v89_v14  ;;  %v1256_v45 = vld [vmem:[%s1709_s1] sm:$0xff] }
  0x8d   :  { %v101_v49 = vand.u32 65535, %v97_v46  ;;  %v102_v50 = vshrl.u32 %v97_v46, 16  ;;  %405 = vmatpush.bf16.msra.mxu0 %v1256_v45  ;;  %v1259_v45 = vld [vmem:[%s1710_s2 + $0x8] sm:$0xff] }
  0x8e   :  { %v126_v55 = vmul.u32 %v124_v52, %v99_v47  ;;  %v127_v56 = vmul.u32 %v123_v51, %v100_v48  ;;  %v125_v60 = vmul.u32 %v123_v51, %v99_v47  ;;  %v128_v0 = vmul.u32 %v124_v52, %v100_v48 }
  0x8f   :  { %v104_v53 = vmul.u32 %v102_v50, %v99_v47  ;;  %v105_v54 = vmul.u32 %v101_v49, %v100_v48  ;;  %v103_v57 = vmul.u32 %v101_v49, %v99_v47  ;;  %v106_v59 = vmul.u32 %v102_v50, %v100_v48 }
  0x90   :  { %v129_v61 = vshll.u32 %v126_v55, 16  ;;  %v131_v4 = vshll.u32 %v127_v56, 16  ;;  %v130_v20 = vshrl.u32 %v126_v55, 16  ;;  %v132_v26 = vshrl.u32 %v127_v56, 16 }
  0x91   :  { %v107_v58 = vshll.u32 %v104_v53, 16  ;;  %v109_v62 = vshll.u32 %v105_v54, 16  ;;  %v108_v15 = vshrl.u32 %v104_v53, 16  ;;  %v110_v24 = vshrl.u32 %v105_v54, 16 }
  0x92   :  { %vm133_vm6 = vc.u32 %v125_v60, %v129_v61  ;;  %v135_v6 = vadd.s32 %v129_v61, %v125_v60 }
  0x93   :  { %vm111_vm5 = vc.u32 %v103_v57, %v107_v58  ;;  %v113_v63 = vadd.s32 %v107_v58, %v103_v57  ;;  %v134_v8 = vsel %vm133_vm6, 1, %v1339_v2  ;;  %vm373_vm6 = vcmask 1041408  }
  0x94   :  { %v112_v3 = vsel %vm111_vm5, 1, %v1339_v2  ;;  %v136_v12 = vadd.s32 %v134_v8, %v128_v0  ;;  %vm137_vm8 = vc.u32 %v135_v6, %v131_v4  ;;  %v139_v29 = vadd.s32 %v135_v6, %v131_v4 }
  0x95   :  { %v114_v7 = vadd.s32 %v112_v3, %v106_v59  ;;  %vm115_vm7 = vc.u32 %v113_v63, %v109_v62  ;;  %v138_v19 = vsel %vm137_vm8, 1, %v1339_v2  ;;  %vm193_vm5 = vweird.f32 %v1392_v5 }
  0x96   :  { %v116_v11 = vsel %vm115_vm7, 1, %v1339_v2  ;;  %v140_v21 = vadd.s32 %v138_v19, %v136_v12  ;;  %vm394_vm7 = vcmask 261120  }
  0x97   :  { %v118_v18 = vadd.s32 %v116_v11, %v114_v7  ;;  %v40_v11 = vlaneseq }
  0x98   :  { %v141_v27 = vadd.s32 %v140_v21, %v130_v20 }
  0x99   :  { %v119_v25 = vadd.s32 %v118_v18, %v108_v15  ;;  %v1458_v20 = vand.u32 127, %v40_v11 }
  0x9a   :  { %v142_v17 = vadd.s32 %v141_v27, %v132_v26 }
  0x9b   :  { %v120_v28 = vadd.s32 %v119_v25, %v110_v24  ;;  %vm49_vm2 = vcmp.lt.s32.totalorder %v1458_v20, 16  ;;  %v371_v25 = vrot.slane %v1047_v22, 6 }
  0x9c   :  { %v146_v2 = vadd.s32 1, %v142_v17 }
  0x9d   :  { %vm145_vm9 = vc.u32 %v120_v28, %v139_v29  ;;  %v144_v43 = vadd.s32 %v139_v29, %v120_v28 }
  0x9e   :  { %v147_v31 = vsel %vm145_vm9, %v146_v2, %v142_v17 }
  0x9f   :  { %v148_v32 = vadd.s32 %v147_v31, %v143_v30 }
  0xa1   :  { %v149_v33 = vadd.s32 536870912, %v148_v32 }
  0xa3   :  { %v150_v35 = vshrl.u32 %v149_v33, 30 }
  0xa5   :  { %v151_v36 = vshll.u32 %v150_v35, 30  ;;  %v174_v57 = vsub.s32 4, %v150_v35 }
  0xa7   :  { %v152_v34 = vsub.s32 %v148_v32, %v151_v36  ;;  %v175_v60 = vsel %vm52_vm12, %v174_v57, %v150_v35  ;;  %v1310_v35 = vld [vmem:[%s1708_s4] ss:$0 sm:$0xff] }
  0xa8   :  { %v177_v3 = vsel %vm51_vm13, 0, %v175_v60 }
  0xa9   :  { %vm153_vm10 = vcmp.lt.s32.totalorder %v152_v34, 0  ;;  %v154_v37 = vsub.s32 0, %v152_v34  ;;  %v194_v10 = vadd.s32 3, %v177_v3  ;;  %v349_v9 = vand.u32 3, %v177_v3 }
  0xaa   :  { %v1487_v3 = vshrl.u32 %v40_v11, 7 }
  0xab   :  { %v155_v39 = vsel %vm153_vm10, %v154_v37, %v152_v34  ;;  %v195_v19 = vand.u32 3, %v194_v10  ;;  %vm350_vm14 = vcmp.lt.s32.totalorder %v349_v9, 2  ;;  %vm351_vm0 = vcmp.eq.s32.totalorder %v349_v9, 0 }
  0xac   :  { %v156_v40 = vclz %v155_v39  ;;  %vm354_vm1 = vcmp.eq.s32.totalorder %v349_v9, 2  ;;  %v1347_v10 = vmov -1.0  }
  0xad   :  { %vm196_vm15 = vcmp.lt.s32.totalorder %v195_v19, 2  ;;  %vm197_vm3 = vcmp.eq.s32.totalorder %v195_v19, 0  ;;  %vm200_vm4 = vcmp.eq.s32.totalorder %v195_v19, 2 }
  0xae   :  { %v1051_v41 = vadd.s32 4294967294, %v156_v40 }
  0xb0   :  { %vm1052_vm11 = vcmp.lt.s32.totalorder %v1051_v41, 0 }
  0xb1   :  { %v159_v42 = vsel %vm1052_vm11, 0, %v1051_v41 }
  0xb2   :  { %v160_v44 = vsub.s32 32, %v159_v42  ;;  %v164_v38 = vsub.s32 4294967266, %v159_v42  ;;  %v161_v46 = vshll.u32 %v152_v34, %v159_v42  ;;  %v1260_v42 = vld [vmem:[%s1710_s2 + $0x10] sm:$0xff] }
  0xb3   :  { %501 = vmatpush.bf16.msra.mxu1 %v1260_v42  ;;  %v1313_v42 = vld [vmem:[%s1708_s4 + $0x1] ss:$0 sm:$0xff] }
  0xb4   :  { %v162_v47 = vshrl.u32 %v144_v43, %v160_v44  ;;  %v165_v48 = vadd.s32 127, %v164_v38 }
  0xb6   :  { %v163_v49 = vor.u32 %v162_v47, %v161_v46  ;;  %v166_v50 = vshll.u32 %v165_v48, 23 }
  0xb7   :  { %502 = vmatpush.bf16.msra.mxu1 %v1259_v45 }
  0xb8   :  { %v167_v51 = vor.u32 4788187, %v166_v50  ;;  %v170_v53 = vcvt.s32.f32 %v163_v49  ;;  %v1258_v49 = vld [vmem:[%s1710_s2] sm:$0xff] }
  0xba   :  { %v168_v52 = vand.u32 2147483647, %v167_v51 }
  0xbb   :  { %503 = vmatpush.bf16.msra.mxu1 %v1258_v49  ;;  %v1315_v49 = vld [vmem:[%s1708_s4 + $0x5] ss:$0 sm:$0xff] }
  0xbc   :  { %v171_v54 = vmul.f32 %v170_v53, %v168_v52 }
  0xbe   :  { %v172_v55 = vxor.u32 2147483648, %v171_v54 }
  0xc0   :  { %v173_v56 = vsel %vm52_vm12, %v172_v55, %v171_v54  ;;  %vm364_vm12 = vcmp.lt.s32.totalorder %v1487_v3, 2 }
  0xc1   :  { %v176_v58 = vsel %vm51_vm13, %v1392_v5, %v173_v56  ;;  %v1346_v56 = vmov 1   ;;  %vm365_vm13 = vcmp.lt.s32.totalorder %v1458_v20, 32 }
  0xc2   :  { %v178_v59 = vmul.f32 %v176_v58, %v176_v58  ;;  %1307 = vset.pattern.permute.xlu1 %v1346_v56 }
  0xc3   :  { %35 = vperm.xlu1 %1307, %v1384_v1  }
  0xc4   :  { %v186_v61 = vmul.f32 -0.00019511016, %v178_v59  ;;  %v179_v62 = vmul.f32 -0.001358992, %v178_v59 }
  0xc6   :  { %v187_v63 = vadd.f32 0.008332121, %v186_v61  ;;  %v180_v0 = vadd.f32 0.041655596, %v179_v62 }
  0xc8   :  { %v188_v4 = vmul.f32 %v187_v63, %v178_v59  ;;  %v181_v6 = vmul.f32 %v180_v0, %v178_v59 }
  0xca   :  { %v189_v7 = vadd.f32 -0.16666654, %v188_v4  ;;  %v182_v8 = vadd.f32 -0.4999988, %v181_v6 }
  0xcc   :  { %v190_v12 = vmul.f32 %v189_v7, %v178_v59  ;;  %v183_v13 = vmul.f32 %v182_v8, %v178_v59 }
  0xce   :  { %v191_v15 = vadd.f32 1.0, %v190_v12  ;;  %v184_v18 = vadd.f32 1.0, %v183_v13 }
  0xd0   :  { %v192_v21 = vmul.f32 %v191_v15, %v176_v58  ;;  %v201_v23 = vxor.u32 2147483648, %v184_v18 }
  0xd2   :  { %v198_v24 = vxor.u32 2147483648, %v192_v21  ;;  %v202_v27 = vsel %vm200_vm4, %v201_v23, %v192_v21  ;;  %v356_v29 = vsel %vm354_vm1, %v201_v23, %v192_v21  ;;  %vm1348_vm1 = vmmov 1  }
  0xd3   :  { %vm492_vm4 = vcmask 523264  }
  0xd4   :  { %v199_v26 = vsel %vm197_vm3, %v184_v18, %v198_v24  ;;  %v353_v28 = vsel %vm351_vm0, %v184_v18, %v198_v24  ;;  %vm1495_vm0 = vmand %vm364_vm12, %vm365_vm13  ;;  %v1263_v24 = vld [vmem:[%s1709_s1 + $0x18] sm:$0xff] }
  0xd5   :  { %v203_v14 = vsel %vm196_vm15, %v199_v26, %v202_v27  ;;  %v357_v17 = vsel %vm350_vm14, %v353_v28, %v356_v29  ;;  %vm367_vm15 = vmor %vm364_vm12, %vm365_vm13  ;;  %540 = vmatpush.bf16.msra.mxu2 %v1263_v24  ;;  %v1267_v26 = vld [vmem:[%s1710_s2 + $0x38] sm:$0xff]  ;;  %v1266_v27 = vld [vmem:[%s1710_s2 + $0x30] sm:$0xff] }
  0xd6   :  { %v204_v2 = vsel %vm193_vm5, nan, %v203_v14  ;;  %v358_v30 = vsel %vm193_vm5, nan, %v357_v17  ;;  %595 = vmatpush.bf16.msra.mxu3 %v1267_v26  ;;  %v1532_v29 = vld [vmem:[%s1707_s0 + $0x4] sm:$0x3]  ;;  %v31_v14 = vpop.permute.xlu0 %30  ;;  %v21_v17 = vld [vmem:[%s1707_s0] sm:$0x3] }
  0xd7   :  { %v361_v31 = vsel %vm49_vm2, %v204_v2, %v358_v30  ;;  %vm1499_vm2 = vmxor %vm367_vm15, %vm1348_vm1  ;;  %v1311_v2 = vld [vmem:[%s1708_s4 + $0x2] ss:$0 sm:$0xff]  ;;  %v1312_v30 = vld [vmem:[%s1708_s4 + $0x3] ss:$0 sm:$0xff]  ;;  %vm604_vm5 = vcmask 254976  }
  0xd8   :  { %v374_v32 = vsel %vm373_vm6, %v361_v31, %v371_v25  ;;  %vm369_vm3 = vmor %vm1495_vm0, %vm1499_vm2  ;;  %v1262_v25 = vld [vmem:[%s1709_s1 + $0x10] sm:$0xff]  ;;  %v1317_v26 = vld [vmem:[%s1708_s4 + $0x9] ss:$0 sm:$0xff] }
  0xd9   :  { %v379_v33 = vpack.c.bf16 %v374_v32, %v374_v32  ;;  %541 = vmatpush.bf16.msra.mxu2 %v1262_v25  ;;  %v33_v32 = vmul.f32 %v31_v14, %v21_v17  ;;  %v1318_v17 = vld [vmem:[%s1708_s4 + $0x6] ss:$0 sm:$0xff] }
  0xda   :  { %596 = vmatpush.bf16.msra.mxu3 %v1266_v27 }
  0xdb   :  { %1064 = vmatmul.msk.bf16.vlgmr.msra.gmra.mxu0 %vm394_vm7, %v379_v33  ;;  %v467_v33 = vsel %vm364_vm12, %v1311_v2, %v1312_v30 }
 0x135   :  { %v36_v28 = vpop.permute.xlu1 %35 }
 0x136   :  { %v38_v31 = vmul.f32 %v1532_v29, %v36_v28 }
 0x158   :  { %v407_v36 = vpop.f32.mrf.mxu0 }
 0x159   :  { %v1470_v34 = vadd.f32 %v1310_v35, %v407_v36  ;;  %v1546_v35 = vadd.f32 %v38_v31, %v33_v32 }
 0x15b   :  { %v412_v5 = vmul.f32 0.70710677, %v1470_v34  ;;  %v411_v15 = vmul.f32 0.5, %v1470_v34  ;;  %v451_v20 = vmax.f32 %v1470_v34, 0.0 }
 0x15d   :  { %v415_v37 = vand.u32 2147483647, %v412_v5  ;;  %vm413_vm14 = vcmp.ge.f32.partialorder %v412_v5, 0.0 }
 0x15e   :  { %v414_v12 = vsel %vm413_vm14, 1.0, %v1347_v10  ;;  %v1271_v10 = vld [vmem:[%s1711_s3 + $0x18] sm:$0xff] }
 0x15f   :  { %v416_v39 = vmul.f32 0.3275911, %v415_v37  ;;  %v442_v54 = vsub.f32 0.0, %v415_v37  ;;  %707 = vmatpush.bf16.msrb.mxu2 %v1271_v10  ;;  %v1281_v10 = vld [vmem:[%s1710_s2 + $0x78] sm:$0xff] }
 0x160   :  { %v409_v40 = vpop.f32.mrf.mxu0 }
 0x161   :  { %v417_v41 = vadd.f32 1.0, %v416_v39  ;;  %v443_v58 = vmul.f32 %v442_v54, %v415_v37 }
 0x163   :  { %1328 = vrcp.f32 %v417_v41  ;;  %v429_v46 = vand.u32 2147483648, %v417_v41  ;;  %v427_v48 = vand.u32 2147483647, %v417_v41  ;;  %vm423_vm9 = vweird.f32 %v417_v41 }
 0x164   :  { %v444_v61 = vmul.f32 1.442695, %v443_v58 }
 0x165   :  { %v430_v51 = vor.u32 1.1754944e-38, %v429_v46  ;;  %vm428_vm11 = vcmp.eq.f32.partialorder %v427_v48, 8.507059e+37  ;;  %v1314_v48 = vld [vmem:[%s1708_s4 + $0x4] ss:$0 sm:$0xff] }
 0x166   :  { %1330 = vpow2.f32 %v444_v61 }
 0x169   :  { %v1329_v43 = vpop.eup %1328 }
 0x16a   :  { %v419_v44 = vmul.f32 %v1329_v43, %v417_v41  ;;  %vm424_vm8 = vweird.f32 %v1329_v43  ;;  %v1265_v41 = vld [vmem:[%s1710_s2 + $0x28] sm:$0xff] }
 0x16b   :  { %vm425_vm10 = vmor %vm423_vm9, %vm424_vm8  ;;  %597 = vmatpush.bf16.msra.mxu3 %v1265_v41 }
 0x16c   :  { %v420_v38 = vsub.f32 1.0, %v419_v44  ;;  %v1331_v7 = vpop.eup %1330 }
 0x16e   :  { %v421_v47 = vmul.f32 %v1329_v43, %v420_v38 }
 0x16f   :  { %598 = vmatpush.bf16.msra.mxu3 %v1264_v16 }
 0x170   :  { %v422_v50 = vadd.f32 %v1329_v43, %v421_v47 }
 0x172   :  { %v426_v52 = vsel %vm425_vm10, %v1329_v43, %v422_v50  ;;  %v563_v50 = vsel %vm364_vm12, %v1314_v48, %v1315_v49  ;;  %v1274_v48 = vld [vmem:[%s1710_s2 + $0x50] sm:$0xff] }
 0x173   :  { %v431_v53 = vsel %vm428_vm11, %v430_v51, %v426_v52 }
 0x174   :  { %v433_v55 = vmul.f32 1.0614054, %v431_v53 }
 0x176   :  { %v434_v57 = vadd.f32 -1.4531521, %v433_v55 }
 0x178   :  { %v435_v59 = vmul.f32 %v434_v57, %v431_v53  ;;  %v1349_v57 = vmov 32.0  }
 0x179   :  { %1332 = vrcp.f32 %v1349_v57 }
 0x17a   :  { %v436_v60 = vadd.f32 1.4214138, %v435_v59 }
 0x17c   :  { %v437_v62 = vmul.f32 %v436_v60, %v431_v53 }
 0x17e   :  { %v438_v63 = vadd.f32 -0.28449672, %v437_v62 }
 0x17f   :  { %v1333_v58 = vpop.eup %1332 }
 0x180   :  { %v439_v0 = vmul.f32 %v438_v63, %v431_v53  ;;  %v609_v59 = vmul.f32 32.0, %v1333_v58  ;;  %v1269_v63 = vld [vmem:[%s1711_s3 + $0x8] sm:$0xff] }
 0x181   :  { %670 = vmatpush.bf16.msrb.mxu0 %v1269_v63 }
 0x182   :  { %v440_v4 = vadd.f32 0.2548296, %v439_v0  ;;  %v610_v60 = vsub.f32 1.0, %v609_v59  ;;  %v1268_v0 = vld [vmem:[%s1711_s3] sm:$0xff] }
 0x184   :  { %v441_v6 = vmul.f32 %v440_v4, %v431_v53  ;;  %v611_v61 = vmul.f32 %v1333_v58, %v610_v60 }
 0x185   :  { %671 = vmatpush.bf16.msrb.mxu0 %v1268_v0 }
 0x186   :  { %v446_v1 = vmul.f32 %v1331_v7, %v441_v6  ;;  %v612_v62 = vadd.f32 %v1333_v58, %v611_v61  ;;  %v1321_v61 = vld [vmem:[%s1708_s4 + $0xb] ss:$0 sm:$0xff] }
 0x188   :  { %v447_v8 = vsub.f32 1.0, %v446_v1 }
 0x189   :  { %889 = vmatpush.bf16.msra.mxu0 %v1281_v10 }
 0x18a   :  { %v448_v13 = vmul.f32 %v447_v8, %v414_v12 }
 0x18c   :  { %v449_v18 = vadd.f32 1.0, %v448_v13  ;;  %v1270_v13 = vld [vmem:[%s1711_s3 + $0x10] sm:$0xff] }
 0x18d   :  { %708 = vmatpush.bf16.msrb.mxu2 %v1270_v13  ;;  %v1279_v13 = vld [vmem:[%s1710_s2 + $0x68] sm:$0xff] }
 0x18e   :  { %v450_v19 = vmul.f32 %v449_v18, %v411_v15 }
 0x190   :  { %v452_v21 = vsel %vm364_vm12, %v450_v19, %v451_v20 }
 0x191   :  { %v453_v22 = vsel %vm369_vm3, %v452_v21, 0.0 }
 0x192   :  { %v462_v23 = vpack.c.bf16 %v453_v22, %v453_v22 }
 0x194   :  { %1081 = vmatmul.msk.bf16.vlgmr.msra.gmra.mxu1 %vm492_vm4, %v462_v23  ;;  %v1316_v23 = vld [vmem:[%s1708_s4 + $0x8] ss:$0 sm:$0xff] }
 0x211   :  { %v505_v36 = vpop.f32.mrf.mxu1 }
 0x212   :  { %v506_v34 = vadd.f32 %v505_v36, %v467_v33  ;;  %v1319_v36 = vld [vmem:[%s1708_s4 + $0x7] ss:$0 sm:$0xff] }
 0x214   :  { %v509_v5 = vadd.f32 %v506_v34, %v1546_v35 }
 0x216   :  { %v510_v37 = vsel %vm373_vm6, %v509_v5, %v506_v34  ;;  %vm613_vm6 = vweird.f32 %v1333_v58 }
 0x217   :  { %v516_v39 = vpack.c.bf16 %v510_v37, %v510_v37  ;;  %v614_v3 = vsel %vm613_vm6, %v1333_v58, %v612_v62  ;;  %v1320_v58 = vld [vmem:[%s1708_s4 + $0xa] ss:$0 sm:$0xff] }
 0x219   :  { %v507_v40 = vpop.f32.mrf.mxu1  ;;  %1094 = vmatmul.msk.bf16.vlgmr.msra.gmra.mxu2 %vm394_vm7, %v516_v39 }
 0x29c   :  { %v543_v43 = vpop.f32.mrf.mxu2 }
 0x29d   :  { %v544_v44 = vadd.f32 %v1313_v42, %v543_v43 }
 0x29f   :  { %v547_v38 = vmax.f32 %v544_v44, 0.0 }
 0x2a1   :  { %v548_v45 = vsel %vm369_vm3, %v547_v38, 0.0 }
 0x2a2   :  { %v558_v46 = vpack.c.bf16 %v548_v45, %v548_v45 }
 0x2a4   :  { %v545_v47 = vpop.f32.mrf.mxu2  ;;  %1119 = vmatmul.msk.bf16.vlgmr.msra.gmra.mxu3 %vm492_vm4, %v558_v46 }
 0x2a5   :  { %v1275_v47 = vld [vmem:[%s1710_s2 + $0x58] sm:$0xff] }
 0x2a6   :  { %795 = vmatpush.bf16.msrb.mxu1 %v1275_v47 }
 0x2aa   :  { %796 = vmatpush.bf16.msrb.mxu1 %v1274_v48 }
 0x327   :  { %v600_v51 = vpop.f32.mrf.mxu3 }
 0x328   :  { %v1574_v52 = vadd.f32 %v600_v51, %v563_v50  ;;  %v1273_v51 = vld [vmem:[%s1710_s2 + $0x48] sm:$0xff] }
 0x329   :  { %797 = vmatpush.bf16.msrb.mxu1 %v1273_v51 }
 0x32a   :  { %v605_v53 = vsel %vm604_vm5, %v1574_v52, 0.0  ;;  %v616_v54 = vmul.f32 %v1574_v52, %v1574_v52 }
 0x32b   :  { %606 = vadd.xlane.f32.xlu1 %v605_v53 }
 0x32c   :  { %v617_v55 = vsel %vm604_vm5, %v616_v54, 0.0 }
 0x32d   :  { %618 = vadd.xlane.f32.xlu2 %v617_v55 }
 0x32f   :  { %v602_v56 = vpop.f32.mrf.mxu3 }
 0x39e   :  { %v607_v4 = vpop.xlane.xlu1 %606 }
 0x39f   :  { %v615_v6 = vmul.f32 %v614_v3, %v607_v4  ;;  %v1277_v4 = vld [vmem:[%s1711_s3 + $0x28] sm:$0xff] }
 0x3a0   :  { %v619_v7 = vpop.xlane.xlu2 %618  ;;  %834 = vmatpush.bf16.msrb.mxu3 %v1277_v4 }
 0x3a1   :  { %v621_v1 = vmul.f32 %v615_v6, %v615_v6  ;;  %v620_v8 = vmul.f32 %v619_v7, %v614_v3  ;;  %v623_v22 = vsub.f32 %v1574_v52, %v615_v6  ;;  %v1276_v6 = vld [vmem:[%s1711_s3 + $0x20] sm:$0xff] }
 0x3a3   :  { %v622_v12 = vsub.f32 %v620_v8, %v621_v1 }
 0x3a4   :  { %835 = vmatpush.bf16.msrb.mxu3 %v1276_v6 }
 0x3a5   :  { %v624_v11 = vadd.f32 1e-05, %v622_v12  ;;  %v1280_v12 = vld [vmem:[%s1710_s2 + $0x70] sm:$0xff] }
 0x3a6   :  { %890 = vmatpush.bf16.msra.mxu0 %v1280_v12 }
 0x3a7   :  { %1334 = vrsqrt.f32 %v624_v11  ;;  %vm631_vm9 = vweird.f32 %v624_v11 }
 0x3aa   :  { %891 = vmatpush.bf16.msra.mxu0 %v1279_v13 }
 0x3ad   :  { %v1335_v9 = vpop.eup %1334 }
 0x3ae   :  { %v626_v15 = vmul.f32 %v1335_v9, %v624_v11  ;;  %vm632_vm8 = vweird.f32 %v1335_v9 }
 0x3af   :  { %vm633_vm10 = vmor %vm631_vm9, %vm632_vm8 }
 0x3b0   :  { %v627_v18 = vmul.f32 %v1335_v9, %v626_v15 }
 0x3b2   :  { %v628_v19 = vmul.f32 0.5, %v627_v18 }
 0x3b4   :  { %v629_v20 = vsub.f32 1.5, %v628_v19 }
 0x3b6   :  { %v630_v21 = vmul.f32 %v1335_v9, %v629_v20  ;;  %v1278_v20 = vld [vmem:[%s1710_s2 + $0x60] sm:$0xff] }
 0x3b7   :  { %892 = vmatpush.bf16.msra.mxu0 %v1278_v20 }
 0x3b8   :  { %v634_v24 = vsel %vm633_vm10, %v1335_v9, %v630_v21  ;;  %v1283_v21 = vld [vmem:[%s1711_s3 + $0x38] sm:$0xff] }
 0x3b9   :  { %v635_v25 = vmul.f32 %v634_v24, %v623_v22  ;;  %928 = vmatpush.bf16.msra.mxu2 %v1283_v21  ;;  %v1282_v22 = vld [vmem:[%s1711_s3 + $0x30] sm:$0xff] }
 0x3bb   :  { %v638_v27 = vmul.f32 %v1316_v23, %v635_v25  ;;  %v1323_v23 = vld [vmem:[%s1708_s4 + $0xd] ss:$0 sm:$0xff] }
 0x3bd   :  { %v641_v28 = vadd.f32 %v1317_v26, %v638_v27  ;;  %929 = vmatpush.bf16.msra.mxu2 %v1282_v22 }
 0x3bf   :  { %v646_v14 = vpack.c.bf16 %v641_v28, %v641_v28 }
 0x3c1   :  { %1128 = vmatmul.msk.bf16.vlgmr.msrb.gmra.mxu0 %vm394_vm7, %v646_v14 }
 0x43e   :  { %v673_v2 = vpop.f32.mrf.mxu0 }
 0x43f   :  { %v674_v30 = vadd.f32 %v1318_v17, %v673_v2  ;;  %v1287_v17 = vld [vmem:[%s1710_s2 + $0x98] sm:$0xff]  ;;  %v1286_v2 = vld [vmem:[%s1710_s2 + $0x90] sm:$0xff] }
 0x441   :  { %v677_v31 = vmax.f32 %v674_v30, 0.0  ;;  %v1285_v30 = vld [vmem:[%s1710_s2 + $0x88] sm:$0xff] }
 0x443   :  { %v683_v32 = vpack.c.bf16 %v677_v31, %v677_v31  ;;  %v1324_v31 = vld [vmem:[%s1708_s4 + $0xe] ss:$0 sm:$0xff] }
 0x445   :  { %1141 = vmatmul.msk.bf16.vlgmr.msrb.gmra.mxu2 %vm394_vm7, %v683_v32 }
 0x446   :  { %v675_v33 = vpop.f32.mrf.mxu0 }
 0x4c8   :  { %v710_v34 = vpop.f32.mrf.mxu2 }
 0x4c9   :  { %v711_v5 = vadd.f32 %v1319_v36, %v710_v34 }
 0x4cb   :  { %v714_v37 = vsel %vm604_vm5, %v711_v5, 0.0  ;;  %v718_v39 = vmul.f32 %v711_v5, %v711_v5 }
 0x4cc   :  { %715 = vadd.xlane.f32.xlu2 %v714_v37  ;;  %v1284_v37 = vld [vmem:[%s1710_s2 + $0x80] sm:$0xff] }
 0x4cd   :  { %v719_v41 = vsel %vm604_vm5, %v718_v39, 0.0  ;;  %v1289_v39 = vld [vmem:[%s1711_s3 + $0x48] sm:$0xff] }
 0x4ce   :  { %1022 = vmatpush.bf16.msra.mxu3 %v1289_v39 }
 0x4d0   :  { %v712_v40 = vpop.f32.mrf.mxu2 }
 0x4d1   :  { %v1288_v40 = vld [vmem:[%s1711_s3 + $0x40] sm:$0xff] }
 0x4d2   :  { %1023 = vmatpush.bf16.msra.mxu3 %v1288_v40 }
 0x4d4   :  { %720 = vadd.xlane.f32.xlu2 %v719_v41  ;;  %v1325_v41 = vld [vmem:[%s1708_s4 + $0xf] ss:$0 sm:$0xff] }
 0x4ec   :  { %842 = vrot.lane.b32.xlu2 %v641_v28, %s1350_s27 }
 0x53f   :  { %v716_v16 = vpop.xlane.xlu2 %715 }
 0x540   :  { %v717_v42 = vmul.f32 %v716_v16, %v614_v3 }
 0x542   :  { %v723_v44 = vmul.f32 %v717_v42, %v717_v42  ;;  %v725_v57 = vsub.f32 %v711_v5, %v717_v42 }
 0x547   :  { %v721_v43 = vpop.xlane.xlu2 %720 }
 0x548   :  { %v722_v38 = vmul.f32 %v721_v43, %v614_v3  ;;  %v1272_v3 = vld [vmem:[%s1710_s2 + $0x40] sm:$0xff] }
 0x549   :  { %798 = vmatpush.bf16.msrb.mxu1 %v1272_v3 }
 0x54a   :  { %v724_v45 = vsub.f32 %v722_v38, %v723_v44 }
 0x54c   :  { %v726_v46 = vadd.f32 1e-05, %v724_v45 }
 0x54d   :  { %983 = vmatpush.bf16.msra.mxu1 %v1287_v17 }
 0x54e   :  { %1336 = vrsqrt.f32 %v726_v46  ;;  %vm733_vm12 = vweird.f32 %v726_v46 }
 0x54f   :  { %v843_v26 = vpop.permute.xlu2 %842 }
 0x551   :  { %984 = vmatpush.bf16.msra.mxu1 %v1286_v2 }
 0x554   :  { %v1337_v49 = vpop.eup %1336 }
 0x555   :  { %v728_v50 = vmul.f32 %v1337_v49, %v726_v46  ;;  %vm734_vm11 = vweird.f32 %v1337_v49  ;;  %985 = vmatpush.bf16.msra.mxu1 %v1285_v30  ;;  %v1326_v46 = vld [vmem:[%s1708_s4 + $0x10] ss:$0 sm:$0xff] }
 0x556   :  { %vm735_vm13 = vmor %vm733_vm12, %vm734_vm11 }
 0x557   :  { %v729_v53 = vmul.f32 %v1337_v49, %v728_v50 }
 0x559   :  { %v730_v54 = vmul.f32 0.5, %v729_v53  ;;  %986 = vmatpush.bf16.msra.mxu1 %v1284_v37  ;;  %v1327_v53 = vld [vmem:[%s1708_s4 + $0x11] ss:$0 sm:$0xff] }
 0x55b   :  { %v731_v55 = vsub.f32 1.5, %v730_v54 }
 0x55d   :  { %v732_v56 = vmul.f32 %v1337_v49, %v731_v55 }
 0x55f   :  { %v736_v59 = vsel %vm735_vm13, %v1337_v49, %v732_v56 }
 0x560   :  { %v737_v60 = vmul.f32 %v736_v59, %v725_v57 }
 0x562   :  { %v740_v62 = vmul.f32 %v1320_v58, %v737_v60 }
 0x564   :  { %v743_v63 = vadd.f32 %v1321_v61, %v740_v62 }
 0x566   :  { %v745_v0 = vrot.slane %v743_v63, 6 }
 0x568   :  { %746 = vrot.lane.b32.xlu0 %v745_v0, %s1350_s27 }
 0x570   :  { %936 = vrot.lane.b32.xlu0 %v1546_v35, %s1350_s27 }
 0x5da   :  { %v747_v7 = vpop.permute.xlu0 %746 }
 0x5db   :  { %v749_v1 = vsel %vm394_vm7, %v1574_v52, %v747_v7  ;;  %v1322_v52 = vld [vmem:[%s1708_s4 + $0xc] ss:$0 sm:$0xff] }
 0x5dc   :  { %v759_v35 = vpack.c.bf16 %v749_v1, %v749_v1 }
 0x5de   :  { %v763_v8 = vrot.slane %v759_v35, 1 }
 0x5e0   :  { %1166 = vmatmul.msk.bf16.vlgmr.msrb.gmra.mxu1 %vm492_vm4, %v763_v8 }
 0x5e2   :  { %v937_v43 = vpop.permute.xlu0 %936 }
 0x65d   :  { %v800_v11 = vpop.f32.mrf.mxu1 }
 0x65e   :  { %v801_v9 = vadd.f32 %v1322_v52, %v800_v11 }
 0x660   :  { %v804_v15 = vmax.f32 %v801_v9, 0.0 }
 0x662   :  { %v810_v18 = vpack.c.bf16 %v804_v15, %v804_v15 }
 0x664   :  { %1179 = vmatmul.msk.bf16.vlgmr.msrb.gmra.mxu3 %vm394_vm7, %v810_v18 }
 0x665   :  { %v802_v19 = vpop.f32.mrf.mxu1 }
 0x6e7   :  { %v837_v24 = vpop.f32.mrf.mxu3 }
 0x6e8   :  { %v838_v25 = vadd.f32 %v1323_v23, %v837_v24 }
 0x6ea   :  { %v845_v27 = vsel %vm394_vm7, %v838_v25, %v843_v26 }
 0x6eb   :  { %v855_v28 = vpack.c.bf16 %v845_v27, %v845_v27 }
 0x6ed   :  { %1204 = vmatmul.msk.bf16.vlgmr.msra.gmra.mxu0 %vm492_vm4, %v855_v28 }
 0x6ef   :  { %v839_v14 = vpop.f32.mrf.mxu3 }
 0x76a   :  { %v894_v32 = vpop.f32.mrf.mxu0 }
 0x76b   :  { %v895_v33 = vadd.f32 %v1324_v31, %v894_v32 }
 0x76d   :  { %v898_v36 = vmax.f32 %v895_v33, 0.0 }
 0x76f   :  { %v904_v34 = vpack.c.bf16 %v898_v36, %v898_v36 }
 0x771   :  { %1217 = vmatmul.msk.bf16.vlgmr.msra.gmra.mxu2 %vm394_vm7, %v904_v34 }
 0x772   :  { %v896_v5 = vpop.f32.mrf.mxu0 }
 0x7f4   :  { %v931_v16 = vpop.f32.mrf.mxu2 }
 0x7f5   :  { %v932_v42 = vadd.f32 %v1325_v41, %v931_v16 }
 0x7f7   :  { %v939_v44 = vsel %vm394_vm7, %v932_v42, %v937_v43 }
 0x7f8   :  { %v949_v38 = vpack.c.bf16 %v939_v44, %v939_v44 }
 0x7fa   :  { %1242 = vmatmul.msk.bf16.vlgmr.msra.gmra.mxu1 %vm492_vm4, %v949_v38 }
 0x7fc   :  { %v933_v45 = vpop.f32.mrf.mxu2 }
 0x877   :  { %v988_v47 = vpop.f32.mrf.mxu1 }
 0x878   :  { %v989_v48 = vadd.f32 %v1326_v46, %v988_v47 }
 0x87a   :  { %v992_v49 = vmax.f32 %v989_v48, 0.0 }
 0x87c   :  { %v998_v50 = vpack.c.bf16 %v992_v49, %v992_v49 }
 0x87e   :  { %1255 = vmatmul.msk.bf16.vlgmr.msra.gmra.mxu3 %vm394_vm7, %v998_v50 }
 0x87f   :  { %v990_v51 = vpop.f32.mrf.mxu1 }
 0x901   :  { %v1025_v54 = vpop.f32.mrf.mxu3 }
 0x902   :  { %v1026_v55 = vadd.f32 %v1327_v53, %v1025_v54 }
 0x904   :  { %v1029_v56 = vsub.f32 %v1026_v55, %v1532_v29 }
 0x906   :  { %v1030_v57 = vmul.f32 %v1029_v56, %v1029_v56 }
 0x908   :  { %v1031_v58 = vsel %vm604_vm5, %v1030_v57, 0.0 }
 0x909   :  { %v1027_v59 = vpop.f32.mrf.mxu3  ;;  %1032 = vadd.xlane.f32.xlu0 %v1031_v58 }
 0x97c   :  { %v1033_v60 = vpop.xlane.xlu0 %1032 }
 0x97d   :  { %v1034_v61 = vrot.slane %v1033_v60, 4 }
 0x97f   :  { %v1035_v62 = vadd.f32 %v1034_v61, %v1033_v60 }
 0x981   :  { %v1036_v63 = vrot.slane %v1035_v62, 2 }
 0x983   :  { %v1037_v0 = vadd.f32 %v1036_v63, %v1035_v62 }
 0x985   :  { %v1038_v3 = vrot.slane %v1037_v0, 1 }
 0x987   :  { %v1039_v4 = vadd.f32 %v1038_v3, %v1037_v0 }
 0x989   :  { %1290 = vpush %v1039_v4 }
 0x9ba   :  { %s1291_s24 = spop %1290 }
 0x9bb   :  { %v1041_v6 = vstv %s1291_s24 }
 0x9bc   :  { %1042 = vst [vmem:[%s1712_s5] sm:$0x1] %v1041_v6 }

</bundles_post_ra>
